<compile_context>
chip_gen: v5e
topology: v5e:2x2
jax: 0.10.0
libtpu: 0.0.40
codegen_flags: <defaults>
</compile_context>

<pallas_src>
import functools

import jax
import jax.numpy as jnp
from jax.experimental import pallas as pl
from jax.experimental.pallas import tpu as pltpu


def _round_up(x, m):
    return (x + m - 1) // m * m


def _choose_m_tiling(m):
    """Row tiling: keep >=2 M tiles whenever possible (v7x megacore) with tm % 8 == 0."""
    if m >= 512:
        tm = 256
        return _round_up(m, tm), tm
    if m >= 16:
        mp = _round_up(m, 16)
        return mp, mp // 2
    mp = _round_up(m, 8)
    return mp, mp


# --------------------------------------------------------------------------- #
# Pallas kernel: conv-as-matmul with fused BN+LeakyReLU prologue, optional fused
# BN-statistics / sigmoid epilogue, f32 VMEM accumulator, bf16 HBM output.
# --------------------------------------------------------------------------- #
def _conv_mm_kernel(scale_ref, shift_ref, lhs_ref, rhs_ref, *rest,
                    leaky, sigmoid, emit_stats):
    if emit_stats:
        out_ref, sum_ref, sq_ref, acc_ref = rest
    else:
        out_ref, acc_ref = rest

    k = pl.program_id(2)

    # Fused prologue (f32 VPU math): BN-apply + LeakyReLU of the previous layer.
    # NaN entries in the patch matrix mark conv zero-padding / ragged fill rows and
    # are mapped to exactly 0 regardless of scale/shift.
    x = lhs_ref[...].astype(jnp.float32)
    a = x * scale_ref[...] + shift_ref[...]
    if leaky:
        a = jnp.where(a > 0, a, 0.2 * a)
    a = jnp.where(x != x, 0.0, a).astype(jnp.bfloat16)

    @pl.when(k == 0)
    def _():
        acc_ref[...] = jnp.zeros_like(acc_ref)

    acc_ref[...] += jnp.dot(a, rhs_ref[...], preferred_element_type=jnp.float32)

    @pl.when(k == pl.num_programs(2) - 1)
    def _():
        z = acc_ref[...]
        if emit_stats:
            cs = jnp.sum(z, axis=0, keepdims=True)        # (1, tn) f32 column sums
            cq = jnp.sum(z * z, axis=0, keepdims=True)
            sum_ref[...] = jnp.broadcast_to(cs[None], sum_ref.shape)
            sq_ref[...] = jnp.broadcast_to(cq[None], sq_ref.shape)
        if sigmoid:
            z = jnp.clip(pl.reciprocal(1.0 + jnp.exp(-z), approx=True), 0.0, 1.0)
        out_ref[...] = z.astype(out_ref.dtype)


def conv_matmul(patches, w2d, col_scale, col_shift, *, tm, leaky, sigmoid,
                emit_stats, out_dtype):
    """(Mp, Kp) bf16 patches @ (Kp, Nc) bf16 weights with fused pro/epilogue."""
    mp, kp = patches.shape
    kp2, nc = w2d.shape
    assert kp == kp2 and kp % 128 == 0 and nc % 128 == 0 and mp % tm == 0

    tk = kp                       # K grid collapses to 1 step for every layer here
    while tk > 1024:
        tk //= 2
    assert kp % tk == 0
    tn = 256 if nc % 256 == 0 else 128

    grid = (mp // tm, nc // tn, kp // tk)
    ni = grid[0]

    out_shapes = [jax.ShapeDtypeStruct((mp, nc), out_dtype)]
    out_specs = [pl.BlockSpec((tm, tn), lambda i, j, k: (i, j))]
    if emit_stats:
        out_shapes += [jax.ShapeDtypeStruct((ni, 8, nc), jnp.float32)] * 2
        out_specs += [pl.BlockSpec((1, 8, tn), lambda i, j, k: (i, 0, j))] * 2

    return pl.pallas_call(
        functools.partial(_conv_mm_kernel, leaky=leaky, sigmoid=sigmoid,
                          emit_stats=emit_stats),
        out_shape=tuple(out_shapes),
        grid_spec=pltpu.PrefetchScalarGridSpec(
            num_scalar_prefetch=0,
            grid=grid,
            in_specs=[
                pl.BlockSpec((1, tk), lambda i, j, k: (0, k)),    # per-column BN scale
                pl.BlockSpec((1, tk), lambda i, j, k: (0, k)),    # per-column BN shift
                pl.BlockSpec((tm, tk), lambda i, j, k: (i, k)),   # bf16 dense patches
                pl.BlockSpec((tk, tn), lambda i, j, k: (k, j)),   # bf16 weights
            ],
            out_specs=tuple(out_specs),
            scratch_shapes=[pltpu.VMEM((tm, tn), jnp.float32)],   # f32 accumulator
        ),
        # Tile VMEM footprint (<=0.3 MiB double-buffered) is far under the scoped
        # budget on v5e/v6e/v7x; no vmem_limit_bytes override needed.
        compiler_params=pltpu.CompilerParams(
            dimension_semantics=("parallel", "parallel", "arbitrary")),
    )(col_scale, col_shift, patches, w2d)


# --------------------------------------------------------------------------- #
# Layout glue (plain JAX): dense im2col with NaN padding sentinels.
# --------------------------------------------------------------------------- #
def _extract_patches_dense(x, ksize, stride, pad, mp, kp):
    """im2col with dense (kh, kw, c) columns. NaN marks conv zero-padding entries and
    ragged M/K fill; the kernel prologue maps NaN -> exactly 0."""
    n, h, w, c = x.shape
    hp, wp = h + 2 * pad, w + 2 * pad
    xpad = jnp.full((n, hp, wp, c), jnp.nan, x.dtype)
    xpad = xpad.at[:, pad:pad + h, pad:pad + w, :].set(x)
    oh = (hp - ksize) // stride + 1
    ow = (wp - ksize) // stride + 1
    taps = []
    for kh in range(ksize):
        for kw in range(ksize):
            taps.append(xpad[:, kh:kh + stride * (oh - 1) + 1:stride,
                             kw:kw + stride * (ow - 1) + 1:stride, :])
    p = jnp.concatenate(taps, axis=-1).reshape(n * oh * ow, ksize * ksize * c)
    full = jnp.full((mp, kp), jnp.nan, x.dtype).at[:p.shape[0], :p.shape[1]].set(p)
    return full, oh, ow


def conv_block(x_nhwc, w2d, c_in, stride, *, in_scale, in_shift, in_leaky,
               sigmoid, emit_stats, out_dtype):
    """y = Conv4x4_pad1(act(x*scale + shift)) [+ sigmoid]; act fused in the matmul
    prologue, optional BN statistics (per-channel sum / sum-sq of the raw conv
    output) fused in the epilogue."""
    ksize = 4
    n, h, w = x_nhwc.shape[:3]
    kp, ocp = w2d.shape
    oh = (h + 2 - ksize) // stride + 1
    ow = (w + 2 - ksize) // stride + 1
    m = n * oh * ow
    mp, tm = _choose_m_tiling(m)

    x = x_nhwc[..., :c_in].astype(jnp.bfloat16)       # drop padded output lanes
    patches, oh, ow = _extract_patches_dense(x, ksize, stride, 1, mp, kp)

    kd = ksize * ksize * c_in
    col_scale = jnp.concatenate(
        [jnp.tile(in_scale.astype(jnp.float32), ksize * ksize),
         jnp.ones((kp - kd,), jnp.float32)])[None, :]
    col_shift = jnp.concatenate(
        [jnp.tile(in_shift.astype(jnp.float32), ksize * ksize),
         jnp.zeros((kp - kd,), jnp.float32)])[None, :]

    res = conv_matmul(patches, w2d, col_scale, col_shift, tm=tm, leaky=in_leaky,
                      sigmoid=sigmoid, emit_stats=emit_stats, out_dtype=out_dtype)
    y = res[0][:m].reshape(n, oh, ow, ocp)
    if not emit_stats:
        return y
    csum = res[1][:, 0, :].sum(axis=0)                # reduce per-M-tile partials
    csq = res[2][:, 0, :].sum(axis=0)
    return y, csum, csq


def bn_fold(csum, csq, m, gamma, beta, eps=1e-5):
    """Training-mode BatchNorm2d (batch mean / biased var) folded into per-channel
    (scale, shift). Stats come from f32 accumulators; E[x^2]-E[x]^2 is clamped at 0
    as a cancellation guard (fine at these magnitudes)."""
    c = gamma.shape[0]
    mean = csum[:c] / m
    var = jnp.maximum(csq[:c] / m - mean * mean, 0.0)
    scale = gamma / jnp.sqrt(var + eps)
    shift = beta - mean * scale
    return scale, shift


# --------------------------------------------------------------------------- #
# Parameters
# --------------------------------------------------------------------------- #
def init_params(key, nc, nf):
    ks = jax.random.split(key, 9)
    p = {}
    p["w1"] = 0.05 * jax.random.normal(ks[0], (nf, nc, 4, 4), jnp.float32)
    p["w2"] = 0.05 * jax.random.normal(ks[1], (nf * 2, nf, 4, 4), jnp.float32)
    p["g2"] = 1.0 + 0.05 * jax.random.normal(ks[2], (nf * 2,), jnp.float32)
    p["b2"] = 0.05 * jax.random.normal(ks[3], (nf * 2,), jnp.float32)
    p["w3"] = 0.05 * jax.random.normal(ks[4], (nf * 4, nf * 2, 4, 4), jnp.float32)
    p["g3"] = 1.0 + 0.05 * jax.random.normal(ks[5], (nf * 4,), jnp.float32)
    p["b3"] = 0.05 * jax.random.normal(ks[6], (nf * 4,), jnp.float32)
    p["w4"] = 0.05 * jax.random.normal(ks[7], (nf * 8, nf * 4, 4, 4), jnp.float32)
    p["g4"] = jnp.ones((nf * 8,), jnp.float32)
    p["b4"] = jnp.zeros((nf * 8,), jnp.float32)
    p["w5"] = 0.05 * jax.random.normal(ks[8], (1, nf * 8, 4, 4), jnp.float32)
    return p


def _prep_conv_weight(w):
    """(OC, IC, K, K) f32 -> (round_up(K*K*IC,128), round_up(OC,128)) bf16, rows
    ordered densely as (kh, kw, ic) — matches the dense patch-column layout."""
    oc, ic, ksize, _ = w.shape
    kd = ksize * ksize * ic
    kp, ocp = _round_up(kd, 128), _round_up(oc, 128)
    wt = jnp.transpose(w, (2, 3, 1, 0)).reshape(kd, oc)
    wp = jnp.zeros((kp, ocp), jnp.float32).at[:kd, :oc].set(wt)
    return wp.astype(jnp.bfloat16)


def prepare_params(raw):
    prep = dict(raw)
    for name in ("w1", "w2", "w3", "w4", "w5"):
        prep[name] = _prep_conv_weight(raw[name])
    return prep


# --------------------------------------------------------------------------- #
# The D discriminator forward
# --------------------------------------------------------------------------- #
def d_forward(params, x_nchw, *, nc, nf):
    x = jnp.transpose(x_nchw, (0, 2, 3, 1))           # single NCHW->NHWC boundary op

    def ident(c):
        return jnp.ones((c,), jnp.float32), jnp.zeros((c,), jnp.float32)

    # layer1: Conv(nc, nf, 4, 2, 1)
    s, sh = ident(nc)
    h1 = conv_block(x, params["w1"], nc, 2, in_scale=s, in_shift=sh, in_leaky=False,
                    sigmoid=False, emit_stats=False, out_dtype=jnp.bfloat16)
    # layer2: LeakyReLU -> Conv(nf, 2nf, 4, 2, 1) -> BN  (leaky fused into conv2's
    # prologue; BN2 statistics fused into conv2's epilogue)
    s, sh = ident(nf)
    h2, s2, q2 = conv_block(h1, params["w2"], nf, 2, in_scale=s, in_shift=sh,
                            in_leaky=True, sigmoid=False, emit_stats=True,
                            out_dtype=jnp.bfloat16)
    sc2, sf2 = bn_fold(s2, q2, h2.shape[0] * h2.shape[1] * h2.shape[2],
                       params["g2"], params["b2"])
    # layer3: LeakyReLU -> Conv(2nf, 4nf, 4, 2, 1) -> BN
    h3, s3, q3 = conv_block(h2, params["w3"], nf * 2, 2, in_scale=sc2, in_shift=sf2,
                            in_leaky=True, sigmoid=False, emit_stats=True,
                            out_dtype=jnp.bfloat16)
    sc3, sf3 = bn_fold(s3, q3, h3.shape[0] * h3.shape[1] * h3.shape[2],
                       params["g3"], params["b3"])
    # layer4: LeakyReLU -> Conv(4nf, 8nf, 4, 1, 1) -> BN
    h4, s4, q4 = conv_block(h3, params["w4"], nf * 4, 1, in_scale=sc3, in_shift=sf3,
                            in_leaky=True, sigmoid=False, emit_stats=True,
                            out_dtype=jnp.bfloat16)
    sc4, sf4 = bn_fold(s4, q4, h4.shape[0] * h4.shape[1] * h4.shape[2],
                       params["g4"], params["b4"])
    # layer5: LeakyReLU -> Conv(8nf, 1, 4, 1, 1) -> Sigmoid (BN4+leaky prologue,
    # approx-sigmoid epilogue, both fused into conv5's matmul)
    h5 = conv_block(h4, params["w5"], nf * 8, 1, in_scale=sc4, in_shift=sf4,
                    in_leaky=True, sigmoid=True, emit_stats=False,
                    out_dtype=jnp.float32)
    return jnp.transpose(h5[..., :1], (0, 3, 1, 2))   # NCHW, single channel


# --------------------------------------------------------------------------- #
# Pure-JAX reference (loose self-check; bf16 activations/MXU => loose tolerance)
# --------------------------------------------------------------------------- #
def _ref_forward(raw, x):
    def conv(h, w, stride):
        return jax.lax.conv_general_dilated(
            h, w, (stride, stride), ((1, 1), (1, 1)),
            dimension_numbers=("NCHW", "OIHW", "NCHW"))

    def bn(h, g, b, eps=1e-5):
        mean = h.mean(axis=(0, 2, 3), keepdims=True)
        var = h.var(axis=(0, 2, 3), keepdims=True)    # biased, train-mode
        return (h - mean) / jnp.sqrt(var + eps) * g[None, :, None, None] \
            + b[None, :, None, None]

    lrelu = lambda t: jnp.where(t > 0, t, 0.2 * t)
    h = conv(x, raw["w1"], 2)
    h = bn(conv(lrelu(h), raw["w2"], 2), raw["g2"], raw["b2"])
    h = bn(conv(lrelu(h), raw["w3"], 2), raw["g3"], raw["b3"])
    h = bn(conv(lrelu(h), raw["w4"], 1), raw["g4"], raw["b4"])
    h = conv(lrelu(h), raw["w5"], 1)
    return jax.nn.sigmoid(h)


if __name__ == "__main__":
    nc, nf = 3, 4
    N, H, W = 2, 32, 32   # spatial: 32 -> 16 -> 8 -> 4 -> 3 -> 2

    key = jax.random.PRNGKey(0)
    kx, kp = jax.random.split(key)
    x = jax.random.normal(kx, (N, nc, H, W), jnp.float32)
    raw = init_params(kp, nc, nf)
    params = prepare_params(raw)

    fwd = jax.jit(functools.partial(d_forward, nc=nc, nf=nf))
    out = fwd(params, x)
    out = jax.block_until_ready(out)

    assert out.shape == (N, 1, 2, 2), out.shape
    assert bool(jnp.all((out >= 0.0) & (out <= 1.0)))

    ref = _ref_forward(raw, x)
    max_err = float(jnp.max(jnp.abs(out - ref)))
    assert max_err < 0.1, f"max |pallas - ref| = {max_err}"

    print("KERNEL_OK")
</pallas_src>

<mosaic_0001>
module attributes {stable_mosaic.version = 11 : i64} {
  func.func @_conv_mm_kernel(%arg0: i32, %arg1: i32, %arg2: i32, %arg3: memref<1x128xf32, #tpu.memory_space<vmem>>, %arg4: memref<1x128xf32, #tpu.memory_space<vmem>>, %arg5: memref<256x128xbf16, #tpu.memory_space<vmem>>, %arg6: memref<128x128xbf16, #tpu.memory_space<vmem>>, %arg7: memref<256x128xbf16, #tpu.memory_space<vmem>>, %arg8: memref<256x128xf32, #tpu.memory_space<vmem>>) attributes {dimension_semantics = [#tpu.dimension_semantics<parallel>, #tpu.dimension_semantics<parallel>, #tpu.dimension_semantics<arbitrary>], iteration_bounds = array<i64: 2, 1, 1>, scalar_prefetch = 0 : i64, scratch_operands = 1 : i64, tpu.core_type = #tpu.core_type<tc>, window_params = [{transform_indices = @transform_0, window_bounds = array<i64: 1, 128>}, {transform_indices = @transform_1, window_bounds = array<i64: 1, 128>}, {transform_indices = @transform_2, window_bounds = array<i64: 256, 128>}, {transform_indices = @transform_3, window_bounds = array<i64: 128, 128>}, {transform_indices = @transform_4, window_bounds = array<i64: 256, 128>}]} {
    %c0 = arith.constant 0 : index
    %c0_0 = arith.constant 0 : index
    %0 = vector.load %arg5[%c0, %c0_0] : memref<256x128xbf16, #tpu.memory_space<vmem>>, vector<256x128xbf16>
    %1 = arith.extf %0 : vector<256x128xbf16> to vector<256x128xf32>
    %c0_1 = arith.constant 0 : index
    %c0_2 = arith.constant 0 : index
    %2 = vector.load %arg3[%c0_1, %c0_2] : memref<1x128xf32, #tpu.memory_space<vmem>>, vector<1x128xf32>
    %3 = vector.broadcast %2 : vector<1x128xf32> to vector<256x128xf32>
    %4 = arith.mulf %1, %3 : vector<256x128xf32>
    %c0_3 = arith.constant 0 : index
    %c0_4 = arith.constant 0 : index
    %5 = vector.load %arg4[%c0_3, %c0_4] : memref<1x128xf32, #tpu.memory_space<vmem>>, vector<1x128xf32>
    %6 = vector.broadcast %5 : vector<1x128xf32> to vector<256x128xf32>
    %7 = arith.addf %4, %6 : vector<256x128xf32>
    %8 = arith.cmpf one, %1, %1 : vector<256x128xf32>
    %cst = arith.constant 0.000000e+00 : f32
    %9 = vector.broadcast %cst : f32 to vector<256x128xf32>
    %10 = arith.select %8, %9, %7 : vector<256x128xi1>, vector<256x128xf32>
    %11 = arith.truncf %10 : vector<256x128xf32> to vector<256x128xbf16>
    %c0_i32 = arith.constant 0 : i32
    %12 = arith.cmpi eq, %arg2, %c0_i32 : i32
    %13 = arith.extui %12 : i1 to i32
    %c0_i32_5 = arith.constant 0 : i32
    %14 = arith.cmpi ne, %13, %c0_i32_5 : i32
    scf.if %14 {
      %cst_15 = arith.constant 0.000000e+00 : f32
      %23 = vector.broadcast %cst_15 : f32 to vector<256x128xf32>
      %c0_16 = arith.constant 0 : index
      %c0_17 = arith.constant 0 : index
      %24 = vector.load %arg8[%c0_16, %c0_17] : memref<256x128xf32, #tpu.memory_space<vmem>>, vector<256x128xf32>
      tpu.vector_store %arg8[%c0_16, %c0_17], %23 {strides = array<i32>} : memref<256x128xf32, #tpu.memory_space<vmem>>, vector<256x128xf32>,
    } else {
    }
    %c0_6 = arith.constant 0 : index
    %c0_7 = arith.constant 0 : index
    %15 = vector.load %arg8[%c0_6, %c0_7] : memref<256x128xf32, #tpu.memory_space<vmem>>, vector<256x128xf32>
    %c0_8 = arith.constant 0 : index
    %c0_9 = arith.constant 0 : index
    %16 = vector.load %arg6[%c0_8, %c0_9] : memref<128x128xbf16, #tpu.memory_space<vmem>>, vector<128x128xbf16>
    %cst_10 = arith.constant dense<0.000000e+00> : vector<256x128xf32>
    %17 = tpu.matmul %11, %16, %cst_10 {dimension_numbers = #tpu.dot_dimension_numbers<[1], [0], [0], [1], [0, 0, 1, 1], [], []>} : vector<256x128xbf16>, vector<128x128xbf16>, vector<256x128xf32> -> vector<256x128xf32>
    %18 = arith.addf %15, %17 : vector<256x128xf32>
    %c0_11 = arith.constant 0 : index
    %c0_12 = arith.constant 0 : index
    %19 = vector.load %arg8[%c0_11, %c0_12] : memref<256x128xf32, #tpu.memory_space<vmem>>, vector<256x128xf32>
    tpu.vector_store %arg8[%c0_11, %c0_12], %18 {strides = array<i32>} : memref<256x128xf32, #tpu.memory_space<vmem>>, vector<256x128xf32>,
    %c0_i32_13 = arith.constant 0 : i32
    %20 = arith.cmpi eq, %arg2, %c0_i32_13 : i32
    %21 = arith.extui %20 : i1 to i32
    %c0_i32_14 = arith.constant 0 : i32
    %22 = arith.cmpi ne, %21, %c0_i32_14 : i32
    scf.if %22 {
      %c0_15 = arith.constant 0 : index
      %c0_16 = arith.constant 0 : index
      %23 = vector.load %arg8[%c0_15, %c0_16] : memref<256x128xf32, #tpu.memory_space<vmem>>, vector<256x128xf32>
      %24 = arith.truncf %23 : vector<256x128xf32> to vector<256x128xbf16>
      %c0_17 = arith.constant 0 : index
      %c0_18 = arith.constant 0 : index
      %25 = vector.load %arg7[%c0_17, %c0_18] : memref<256x128xbf16, #tpu.memory_space<vmem>>, vector<256x128xbf16>
      tpu.vector_store %arg7[%c0_17, %c0_18], %24 {strides = array<i32>} : memref<256x128xbf16, #tpu.memory_space<vmem>>, vector<256x128xbf16>,
    } else {
    }
    return
  }
  func.func @transform_0(%arg0: i32, %arg1: i32, %arg2: i32) -> (i32, i32) {
    %c0_i32 = arith.constant 0 : i32
    %c0_i32_0 = arith.constant 0 : i32
    return %c0_i32, %arg2 : i32, i32
  }
  func.func @transform_1(%arg0: i32, %arg1: i32, %arg2: i32) -> (i32, i32) {
    %c0_i32 = arith.constant 0 : i32
    %c0_i32_0 = arith.constant 0 : i32
    return %c0_i32, %arg2 : i32, i32
  }
  func.func @transform_2(%arg0: i32, %arg1: i32, %arg2: i32) -> (i32, i32) {
    %c0_i32 = arith.constant 0 : i32
    return %arg0, %arg2 : i32, i32
  }
  func.func @transform_3(%arg0: i32, %arg1: i32, %arg2: i32) -> (i32, i32) {
    %c0_i32 = arith.constant 0 : i32
    return %arg2, %arg1 : i32, i32
  }
  func.func @transform_4(%arg0: i32, %arg1: i32, %arg2: i32) -> (i32, i32) {
    %c0_i32 = arith.constant 0 : i32
    return %arg0, %arg1 : i32, i32
  }
}

module attributes {stable_mosaic.version = 11 : i64} {
  func.func @_conv_mm_kernel(%arg0: i32, %arg1: i32, %arg2: i32, %arg3: memref<1x128xf32, #tpu.memory_space<vmem>>, %arg4: memref<1x128xf32, #tpu.memory_space<vmem>>, %arg5: memref<64x128xbf16, #tpu.memory_space<vmem>>, %arg6: memref<128x128xbf16, #tpu.memory_space<vmem>>, %arg7: memref<64x128xbf16, #tpu.memory_space<vmem>>, %arg8: memref<1x8x128xf32, #tpu.memory_space<vmem>>, %arg9: memref<1x8x128xf32, #tpu.memory_space<vmem>>, %arg10: memref<64x128xf32, #tpu.memory_space<vmem>>) attributes {dimension_semantics = [#tpu.dimension_semantics<parallel>, #tpu.dimension_semantics<parallel>, #tpu.dimension_semantics<arbitrary>], iteration_bounds = array<i64: 2, 1, 1>, scalar_prefetch = 0 : i64, scratch_operands = 1 : i64, tpu.core_type = #tpu.core_type<tc>, window_params = [{transform_indices = @transform_0, window_bounds = array<i64: 1, 128>}, {transform_indices = @transform_1, window_bounds = array<i64: 1, 128>}, {transform_indices = @transform_2, window_bounds = array<i64: 64, 128>}, {transform_indices = @transform_3, window_bounds = array<i64: 128, 128>}, {transform_indices = @transform_4, window_bounds = array<i64: 64, 128>}, {transform_indices = @transform_5, window_bounds = array<i64: 1, 8, 128>}, {transform_indices = @transform_6, window_bounds = array<i64: 1, 8, 128>}]} {
    %c0 = arith.constant 0 : index
    %c0_0 = arith.constant 0 : index
    %0 = vector.load %arg5[%c0, %c0_0] : memref<64x128xbf16, #tpu.memory_space<vmem>>, vector<64x128xbf16>
    %1 = arith.extf %0 : vector<64x128xbf16> to vector<64x128xf32>
    %c0_1 = arith.constant 0 : index
    %c0_2 = arith.constant 0 : index
    %2 = vector.load %arg3[%c0_1, %c0_2] : memref<1x128xf32, #tpu.memory_space<vmem>>, vector<1x128xf32>
    %3 = vector.broadcast %2 : vector<1x128xf32> to vector<64x128xf32>
    %4 = arith.mulf %1, %3 : vector<64x128xf32>
    %c0_3 = arith.constant 0 : index
    %c0_4 = arith.constant 0 : index
    %5 = vector.load %arg4[%c0_3, %c0_4] : memref<1x128xf32, #tpu.memory_space<vmem>>, vector<1x128xf32>
    %6 = vector.broadcast %5 : vector<1x128xf32> to vector<64x128xf32>
    %7 = arith.addf %4, %6 : vector<64x128xf32>
    %cst = arith.constant 0.000000e+00 : f32
    %8 = vector.broadcast %cst : f32 to vector<64x128xf32>
    %9 = arith.cmpf ogt, %7, %8 : vector<64x128xf32>
    %cst_5 = arith.constant 2.000000e-01 : f32
    %10 = vector.broadcast %cst_5 : f32 to vector<64x128xf32>
    %11 = arith.mulf %10, %7 : vector<64x128xf32>
    %12 = arith.select %9, %7, %11 : vector<64x128xi1>, vector<64x128xf32>
    %13 = arith.cmpf one, %1, %1 : vector<64x128xf32>
    %cst_6 = arith.constant 0.000000e+00 : f32
    %14 = vector.broadcast %cst_6 : f32 to vector<64x128xf32>
    %15 = arith.select %13, %14, %12 : vector<64x128xi1>, vector<64x128xf32>
    %16 = arith.truncf %15 : vector<64x128xf32> to vector<64x128xbf16>
    %c0_i32 = arith.constant 0 : i32
    %17 = arith.cmpi eq, %arg2, %c0_i32 : i32
    %18 = arith.extui %17 : i1 to i32
    %c0_i32_7 = arith.constant 0 : i32
    %19 = arith.cmpi ne, %18, %c0_i32_7 : i32
    scf.if %19 {
      %cst_17 = arith.constant 0.000000e+00 : f32
      %28 = vector.broadcast %cst_17 : f32 to vector<64x128xf32>
      %c0_18 = arith.constant 0 : index
      %c0_19 = arith.constant 0 : index
      %29 = vector.load %arg10[%c0_18, %c0_19] : memref<64x128xf32, #tpu.memory_space<vmem>>, vector<64x128xf32>
      tpu.vector_store %arg10[%c0_18, %c0_19], %28 {strides = array<i32>} : memref<64x128xf32, #tpu.memory_space<vmem>>, vector<64x128xf32>,
    } else {
    }
    %c0_8 = arith.constant 0 : index
    %c0_9 = arith.constant 0 : index
    %20 = vector.load %arg10[%c0_8, %c0_9] : memref<64x128xf32, #tpu.memory_space<vmem>>, vector<64x128xf32>
    %c0_10 = arith.constant 0 : index
    %c0_11 = arith.constant 0 : index
    %21 = vector.load %arg6[%c0_10, %c0_11] : memref<128x128xbf16, #tpu.memory_space<vmem>>, vector<128x128xbf16>
    %cst_12 = arith.constant dense<0.000000e+00> : vector<64x128xf32>
    %22 = tpu.matmul %16, %21, %cst_12 {dimension_numbers = #tpu.dot_dimension_numbers<[1], [0], [0], [1], [0, 0, 1, 1], [], []>} : vector<64x128xbf16>, vector<128x128xbf16>, vector<64x128xf32> -> vector<64x128xf32>
    %23 = arith.addf %20, %22 : vector<64x128xf32>
    %c0_13 = arith.constant 0 : index
    %c0_14 = arith.constant 0 : index
    %24 = vector.load %arg10[%c0_13, %c0_14] : memref<64x128xf32, #tpu.memory_space<vmem>>, vector<64x128xf32>
    tpu.vector_store %arg10[%c0_13, %c0_14], %23 {strides = array<i32>} : memref<64x128xf32, #tpu.memory_space<vmem>>, vector<64x128xf32>,
    %c0_i32_15 = arith.constant 0 : i32
    %25 = arith.cmpi eq, %arg2, %c0_i32_15 : i32
    %26 = arith.extui %25 : i1 to i32
    %c0_i32_16 = arith.constant 0 : i32
    %27 = arith.cmpi ne, %26, %c0_i32_16 : i32
    scf.if %27 {
      %c0_17 = arith.constant 0 : index
      %c0_18 = arith.constant 0 : index
      %28 = vector.load %arg10[%c0_17, %c0_18] : memref<64x128xf32, #tpu.memory_space<vmem>>, vector<64x128xf32>
      %cst_19 = arith.constant dense<0.000000e+00> : vector<128xf32>
      %29 = vector.multi_reduction <add>, %28, %cst_19 [0] : vector<64x128xf32> to vector<128xf32>
      %30 = vector.shape_cast %29 : vector<128xf32> to vector<1x128xf32>
      %31 = arith.mulf %28, %28 : vector<64x128xf32>
      %cst_20 = arith.constant dense<0.000000e+00> : vector<128xf32>
      %32 = vector.multi_reduction <add>, %31, %cst_20 [0] : vector<64x128xf32> to vector<128xf32>
      %33 = vector.shape_cast %32 : vector<128xf32> to vector<1x128xf32>
      %34 = vector.shape_cast %30 : vector<1x128xf32> to vector<1x1x128xf32>
      %35 = vector.shape_cast %34 : vector<1x1x128xf32> to vector<1x1x128xf32>
      %36 = vector.broadcast %35 : vector<1x1x128xf32> to vector<1x8x128xf32>
      %c0_21 = arith.constant 0 : index
      %c0_22 = arith.constant 0 : index
      %c0_23 = arith.constant 0 : index
      %37 = vector.load %arg8[%c0_21, %c0_22, %c0_23] : memref<1x8x128xf32, #tpu.memory_space<vmem>>, vector<1x8x128xf32>
      tpu.vector_store %arg8[%c0_21, %c0_22, %c0_23], %36 {strides = array<i32>} : memref<1x8x128xf32, #tpu.memory_space<vmem>>, vector<1x8x128xf32>,
      %38 = vector.shape_cast %33 : vector<1x128xf32> to vector<1x1x128xf32>
      %39 = vector.shape_cast %38 : vector<1x1x128xf32> to vector<1x1x128xf32>
      %40 = vector.broadcast %39 : vector<1x1x128xf32> to vector<1x8x128xf32>
      %c0_24 = arith.constant 0 : index
      %c0_25 = arith.constant 0 : index
      %c0_26 = arith.constant 0 : index
      %41 = vector.load %arg9[%c0_24, %c0_25, %c0_26] : memref<1x8x128xf32, #tpu.memory_space<vmem>>, vector<1x8x128xf32>
      tpu.vector_store %arg9[%c0_24, %c0_25, %c0_26], %40 {strides = array<i32>} : memref<1x8x128xf32, #tpu.memory_space<vmem>>, vector<1x8x128xf32>,
      %42 = arith.truncf %28 : vector<64x128xf32> to vector<64x128xbf16>
      %c0_27 = arith.constant 0 : index
      %c0_28 = arith.constant 0 : index
      %43 = vector.load %arg7[%c0_27, %c0_28] : memref<64x128xbf16, #tpu.memory_space<vmem>>, vector<64x128xbf16>
      tpu.vector_store %arg7[%c0_27, %c0_28], %42 {strides = array<i32>} : memref<64x128xbf16, #tpu.memory_space<vmem>>, vector<64x128xbf16>,
    } else {
    }
    return
  }
  func.func @transform_0(%arg0: i32, %arg1: i32, %arg2: i32) -> (i32, i32) {
    %c0_i32 = arith.constant 0 : i32
    %c0_i32_0 = arith.constant 0 : i32
    return %c0_i32, %arg2 : i32, i32
  }
  func.func @transform_1(%arg0: i32, %arg1: i32, %arg2: i32) -> (i32, i32) {
    %c0_i32 = arith.constant 0 : i32
    %c0_i32_0 = arith.constant 0 : i32
    return %c0_i32, %arg2 : i32, i32
  }
  func.func @transform_2(%arg0: i32, %arg1: i32, %arg2: i32) -> (i32, i32) {
    %c0_i32 = arith.constant 0 : i32
    return %arg0, %arg2 : i32, i32
  }
  func.func @transform_3(%arg0: i32, %arg1: i32, %arg2: i32) -> (i32, i32) {
    %c0_i32 = arith.constant 0 : i32
    return %arg2, %arg1 : i32, i32
  }
  func.func @transform_4(%arg0: i32, %arg1: i32, %arg2: i32) -> (i32, i32) {
    %c0_i32 = arith.constant 0 : i32
    return %arg0, %arg1 : i32, i32
  }
  func.func @transform_5(%arg0: i32, %arg1: i32, %arg2: i32) -> (i32, i32, i32) {
    %c0_i32 = arith.constant 0 : i32
    %c0_i32_0 = arith.constant 0 : i32
    return %arg0, %c0_i32, %arg1 : i32, i32, i32
  }
  func.func @transform_6(%arg0: i32, %arg1: i32, %arg2: i32) -> (i32, i32, i32) {
    %c0_i32 = arith.constant 0 : i32
    %c0_i32_0 = arith.constant 0 : i32
    return %arg0, %c0_i32, %arg1 : i32, i32, i32
  }
}

module attributes {stable_mosaic.version = 11 : i64} {
  func.func @_conv_mm_kernel(%arg0: i32, %arg1: i32, %arg2: i32, %arg3: memref<1x128xf32, #tpu.memory_space<vmem>>, %arg4: memref<1x128xf32, #tpu.memory_space<vmem>>, %arg5: memref<16x128xbf16, #tpu.memory_space<vmem>>, %arg6: memref<128x128xbf16, #tpu.memory_space<vmem>>, %arg7: memref<16x128xbf16, #tpu.memory_space<vmem>>, %arg8: memref<1x8x128xf32, #tpu.memory_space<vmem>>, %arg9: memref<1x8x128xf32, #tpu.memory_space<vmem>>, %arg10: memref<16x128xf32, #tpu.memory_space<vmem>>) attributes {dimension_semantics = [#tpu.dimension_semantics<parallel>, #tpu.dimension_semantics<parallel>, #tpu.dimension_semantics<arbitrary>], iteration_bounds = array<i64: 2, 1, 1>, scalar_prefetch = 0 : i64, scratch_operands = 1 : i64, tpu.core_type = #tpu.core_type<tc>, window_params = [{transform_indices = @transform_0, window_bounds = array<i64: 1, 128>}, {transform_indices = @transform_1, window_bounds = array<i64: 1, 128>}, {transform_indices = @transform_2, window_bounds = array<i64: 16, 128>}, {transform_indices = @transform_3, window_bounds = array<i64: 128, 128>}, {transform_indices = @transform_4, window_bounds = array<i64: 16, 128>}, {transform_indices = @transform_5, window_bounds = array<i64: 1, 8, 128>}, {transform_indices = @transform_6, window_bounds = array<i64: 1, 8, 128>}]} {
    %c0 = arith.constant 0 : index
    %c0_0 = arith.constant 0 : index
    %0 = vector.load %arg5[%c0, %c0_0] : memref<16x128xbf16, #tpu.memory_space<vmem>>, vector<16x128xbf16>
    %1 = arith.extf %0 : vector<16x128xbf16> to vector<16x128xf32>
    %c0_1 = arith.constant 0 : index
    %c0_2 = arith.constant 0 : index
    %2 = vector.load %arg3[%c0_1, %c0_2] : memref<1x128xf32, #tpu.memory_space<vmem>>, vector<1x128xf32>
    %3 = vector.broadcast %2 : vector<1x128xf32> to vector<16x128xf32>
    %4 = arith.mulf %1, %3 : vector<16x128xf32>
    %c0_3 = arith.constant 0 : index
    %c0_4 = arith.constant 0 : index
    %5 = vector.load %arg4[%c0_3, %c0_4] : memref<1x128xf32, #tpu.memory_space<vmem>>, vector<1x128xf32>
    %6 = vector.broadcast %5 : vector<1x128xf32> to vector<16x128xf32>
    %7 = arith.addf %4, %6 : vector<16x128xf32>
    %cst = arith.constant 0.000000e+00 : f32
    %8 = vector.broadcast %cst : f32 to vector<16x128xf32>
    %9 = arith.cmpf ogt, %7, %8 : vector<16x128xf32>
    %cst_5 = arith.constant 2.000000e-01 : f32
    %10 = vector.broadcast %cst_5 : f32 to vector<16x128xf32>
    %11 = arith.mulf %10, %7 : vector<16x128xf32>
    %12 = arith.select %9, %7, %11 : vector<16x128xi1>, vector<16x128xf32>
    %13 = arith.cmpf one, %1, %1 : vector<16x128xf32>
    %cst_6 = arith.constant 0.000000e+00 : f32
    %14 = vector.broadcast %cst_6 : f32 to vector<16x128xf32>
    %15 = arith.select %13, %14, %12 : vector<16x128xi1>, vector<16x128xf32>
    %16 = arith.truncf %15 : vector<16x128xf32> to vector<16x128xbf16>
    %c0_i32 = arith.constant 0 : i32
    %17 = arith.cmpi eq, %arg2, %c0_i32 : i32
    %18 = arith.extui %17 : i1 to i32
    %c0_i32_7 = arith.constant 0 : i32
    %19 = arith.cmpi ne, %18, %c0_i32_7 : i32
    scf.if %19 {
      %cst_17 = arith.constant 0.000000e+00 : f32
      %28 = vector.broadcast %cst_17 : f32 to vector<16x128xf32>
      %c0_18 = arith.constant 0 : index
      %c0_19 = arith.constant 0 : index
      %29 = vector.load %arg10[%c0_18, %c0_19] : memref<16x128xf32, #tpu.memory_space<vmem>>, vector<16x128xf32>
      tpu.vector_store %arg10[%c0_18, %c0_19], %28 {strides = array<i32>} : memref<16x128xf32, #tpu.memory_space<vmem>>, vector<16x128xf32>,
    } else {
    }
    %c0_8 = arith.constant 0 : index
    %c0_9 = arith.constant 0 : index
    %20 = vector.load %arg10[%c0_8, %c0_9] : memref<16x128xf32, #tpu.memory_space<vmem>>, vector<16x128xf32>
    %c0_10 = arith.constant 0 : index
    %c0_11 = arith.constant 0 : index
    %21 = vector.load %arg6[%c0_10, %c0_11] : memref<128x128xbf16, #tpu.memory_space<vmem>>, vector<128x128xbf16>
    %cst_12 = arith.constant dense<0.000000e+00> : vector<16x128xf32>
    %22 = tpu.matmul %16, %21, %cst_12 {dimension_numbers = #tpu.dot_dimension_numbers<[1], [0], [0], [1], [0, 0, 1, 1], [], []>} : vector<16x128xbf16>, vector<128x128xbf16>, vector<16x128xf32> -> vector<16x128xf32>
    %23 = arith.addf %20, %22 : vector<16x128xf32>
    %c0_13 = arith.constant 0 : index
    %c0_14 = arith.constant 0 : index
    %24 = vector.load %arg10[%c0_13, %c0_14] : memref<16x128xf32, #tpu.memory_space<vmem>>, vector<16x128xf32>
    tpu.vector_store %arg10[%c0_13, %c0_14], %23 {strides = array<i32>} : memref<16x128xf32, #tpu.memory_space<vmem>>, vector<16x128xf32>,
    %c0_i32_15 = arith.constant 0 : i32
    %25 = arith.cmpi eq, %arg2, %c0_i32_15 : i32
    %26 = arith.extui %25 : i1 to i32
    %c0_i32_16 = arith.constant 0 : i32
    %27 = arith.cmpi ne, %26, %c0_i32_16 : i32
    scf.if %27 {
      %c0_17 = arith.constant 0 : index
      %c0_18 = arith.constant 0 : index
      %28 = vector.load %arg10[%c0_17, %c0_18] : memref<16x128xf32, #tpu.memory_space<vmem>>, vector<16x128xf32>
      %cst_19 = arith.constant dense<0.000000e+00> : vector<128xf32>
      %29 = vector.multi_reduction <add>, %28, %cst_19 [0] : vector<16x128xf32> to vector<128xf32>
      %30 = vector.shape_cast %29 : vector<128xf32> to vector<1x128xf32>
      %31 = arith.mulf %28, %28 : vector<16x128xf32>
      %cst_20 = arith.constant dense<0.000000e+00> : vector<128xf32>
      %32 = vector.multi_reduction <add>, %31, %cst_20 [0] : vector<16x128xf32> to vector<128xf32>
      %33 = vector.shape_cast %32 : vector<128xf32> to vector<1x128xf32>
      %34 = vector.shape_cast %30 : vector<1x128xf32> to vector<1x1x128xf32>
      %35 = vector.shape_cast %34 : vector<1x1x128xf32> to vector<1x1x128xf32>
      %36 = vector.broadcast %35 : vector<1x1x128xf32> to vector<1x8x128xf32>
      %c0_21 = arith.constant 0 : index
      %c0_22 = arith.constant 0 : index
      %c0_23 = arith.constant 0 : index
      %37 = vector.load %arg8[%c0_21, %c0_22, %c0_23] : memref<1x8x128xf32, #tpu.memory_space<vmem>>, vector<1x8x128xf32>
      tpu.vector_store %arg8[%c0_21, %c0_22, %c0_23], %36 {strides = array<i32>} : memref<1x8x128xf32, #tpu.memory_space<vmem>>, vector<1x8x128xf32>,
      %38 = vector.shape_cast %33 : vector<1x128xf32> to vector<1x1x128xf32>
      %39 = vector.shape_cast %38 : vector<1x1x128xf32> to vector<1x1x128xf32>
      %40 = vector.broadcast %39 : vector<1x1x128xf32> to vector<1x8x128xf32>
      %c0_24 = arith.constant 0 : index
      %c0_25 = arith.constant 0 : index
      %c0_26 = arith.constant 0 : index
      %41 = vector.load %arg9[%c0_24, %c0_25, %c0_26] : memref<1x8x128xf32, #tpu.memory_space<vmem>>, vector<1x8x128xf32>
      tpu.vector_store %arg9[%c0_24, %c0_25, %c0_26], %40 {strides = array<i32>} : memref<1x8x128xf32, #tpu.memory_space<vmem>>, vector<1x8x128xf32>,
      %42 = arith.truncf %28 : vector<16x128xf32> to vector<16x128xbf16>
      %c0_27 = arith.constant 0 : index
      %c0_28 = arith.constant 0 : index
      %43 = vector.load %arg7[%c0_27, %c0_28] : memref<16x128xbf16, #tpu.memory_space<vmem>>, vector<16x128xbf16>
      tpu.vector_store %arg7[%c0_27, %c0_28], %42 {strides = array<i32>} : memref<16x128xbf16, #tpu.memory_space<vmem>>, vector<16x128xbf16>,
    } else {
    }
    return
  }
  func.func @transform_0(%arg0: i32, %arg1: i32, %arg2: i32) -> (i32, i32) {
    %c0_i32 = arith.constant 0 : i32
    %c0_i32_0 = arith.constant 0 : i32
    return %c0_i32, %arg2 : i32, i32
  }
  func.func @transform_1(%arg0: i32, %arg1: i32, %arg2: i32) -> (i32, i32) {
    %c0_i32 = arith.constant 0 : i32
    %c0_i32_0 = arith.constant 0 : i32
    return %c0_i32, %arg2 : i32, i32
  }
  func.func @transform_2(%arg0: i32, %arg1: i32, %arg2: i32) -> (i32, i32) {
    %c0_i32 = arith.constant 0 : i32
    return %arg0, %arg2 : i32, i32
  }
  func.func @transform_3(%arg0: i32, %arg1: i32, %arg2: i32) -> (i32, i32) {
    %c0_i32 = arith.constant 0 : i32
    return %arg2, %arg1 : i32, i32
  }
  func.func @transform_4(%arg0: i32, %arg1: i32, %arg2: i32) -> (i32, i32) {
    %c0_i32 = arith.constant 0 : i32
    return %arg0, %arg1 : i32, i32
  }
  func.func @transform_5(%arg0: i32, %arg1: i32, %arg2: i32) -> (i32, i32, i32) {
    %c0_i32 = arith.constant 0 : i32
    %c0_i32_0 = arith.constant 0 : i32
    return %arg0, %c0_i32, %arg1 : i32, i32, i32
  }
  func.func @transform_6(%arg0: i32, %arg1: i32, %arg2: i32) -> (i32, i32, i32) {
    %c0_i32 = arith.constant 0 : i32
    %c0_i32_0 = arith.constant 0 : i32
    return %arg0, %c0_i32, %arg1 : i32, i32, i32
  }
}

module attributes {stable_mosaic.version = 11 : i64} {
  func.func @_conv_mm_kernel(%arg0: i32, %arg1: i32, %arg2: i32, %arg3: memref<1x256xf32, #tpu.memory_space<vmem>>, %arg4: memref<1x256xf32, #tpu.memory_space<vmem>>, %arg5: memref<16x256xbf16, #tpu.memory_space<vmem>>, %arg6: memref<256x128xbf16, #tpu.memory_space<vmem>>, %arg7: memref<16x128xbf16, #tpu.memory_space<vmem>>, %arg8: memref<1x8x128xf32, #tpu.memory_space<vmem>>, %arg9: memref<1x8x128xf32, #tpu.memory_space<vmem>>, %arg10: memref<16x128xf32, #tpu.memory_space<vmem>>) attributes {dimension_semantics = [#tpu.dimension_semantics<parallel>, #tpu.dimension_semantics<parallel>, #tpu.dimension_semantics<arbitrary>], iteration_bounds = array<i64: 2, 1, 1>, scalar_prefetch = 0 : i64, scratch_operands = 1 : i64, tpu.core_type = #tpu.core_type<tc>, window_params = [{transform_indices = @transform_0, window_bounds = array<i64: 1, 256>}, {transform_indices = @transform_1, window_bounds = array<i64: 1, 256>}, {transform_indices = @transform_2, window_bounds = array<i64: 16, 256>}, {transform_indices = @transform_3, window_bounds = array<i64: 256, 128>}, {transform_indices = @transform_4, window_bounds = array<i64: 16, 128>}, {transform_indices = @transform_5, window_bounds = array<i64: 1, 8, 128>}, {transform_indices = @transform_6, window_bounds = array<i64: 1, 8, 128>}]} {
    %c0 = arith.constant 0 : index
    %c0_0 = arith.constant 0 : index
    %0 = vector.load %arg5[%c0, %c0_0] : memref<16x256xbf16, #tpu.memory_space<vmem>>, vector<16x256xbf16>
    %1 = arith.extf %0 : vector<16x256xbf16> to vector<16x256xf32>
    %c0_1 = arith.constant 0 : index
    %c0_2 = arith.constant 0 : index
    %2 = vector.load %arg3[%c0_1, %c0_2] : memref<1x256xf32, #tpu.memory_space<vmem>>, vector<1x256xf32>
    %3 = vector.broadcast %2 : vector<1x256xf32> to vector<16x256xf32>
    %4 = arith.mulf %1, %3 : vector<16x256xf32>
    %c0_3 = arith.constant 0 : index
    %c0_4 = arith.constant 0 : index
    %5 = vector.load %arg4[%c0_3, %c0_4] : memref<1x256xf32, #tpu.memory_space<vmem>>, vector<1x256xf32>
    %6 = vector.broadcast %5 : vector<1x256xf32> to vector<16x256xf32>
    %7 = arith.addf %4, %6 : vector<16x256xf32>
    %cst = arith.constant 0.000000e+00 : f32
    %8 = vector.broadcast %cst : f32 to vector<16x256xf32>
    %9 = arith.cmpf ogt, %7, %8 : vector<16x256xf32>
    %cst_5 = arith.constant 2.000000e-01 : f32
    %10 = vector.broadcast %cst_5 : f32 to vector<16x256xf32>
    %11 = arith.mulf %10, %7 : vector<16x256xf32>
    %12 = arith.select %9, %7, %11 : vector<16x256xi1>, vector<16x256xf32>
    %13 = arith.cmpf one, %1, %1 : vector<16x256xf32>
    %cst_6 = arith.constant 0.000000e+00 : f32
    %14 = vector.broadcast %cst_6 : f32 to vector<16x256xf32>
    %15 = arith.select %13, %14, %12 : vector<16x256xi1>, vector<16x256xf32>
    %16 = arith.truncf %15 : vector<16x256xf32> to vector<16x256xbf16>
    %c0_i32 = arith.constant 0 : i32
    %17 = arith.cmpi eq, %arg2, %c0_i32 : i32
    %18 = arith.extui %17 : i1 to i32
    %c0_i32_7 = arith.constant 0 : i32
    %19 = arith.cmpi ne, %18, %c0_i32_7 : i32
    scf.if %19 {
      %cst_17 = arith.constant 0.000000e+00 : f32
      %28 = vector.broadcast %cst_17 : f32 to vector<16x128xf32>
      %c0_18 = arith.constant 0 : index
      %c0_19 = arith.constant 0 : index
      %29 = vector.load %arg10[%c0_18, %c0_19] : memref<16x128xf32, #tpu.memory_space<vmem>>, vector<16x128xf32>
      tpu.vector_store %arg10[%c0_18, %c0_19], %28 {strides = array<i32>} : memref<16x128xf32, #tpu.memory_space<vmem>>, vector<16x128xf32>,
    } else {
    }
    %c0_8 = arith.constant 0 : index
    %c0_9 = arith.constant 0 : index
    %20 = vector.load %arg10[%c0_8, %c0_9] : memref<16x128xf32, #tpu.memory_space<vmem>>, vector<16x128xf32>
    %c0_10 = arith.constant 0 : index
    %c0_11 = arith.constant 0 : index
    %21 = vector.load %arg6[%c0_10, %c0_11] : memref<256x128xbf16, #tpu.memory_space<vmem>>, vector<256x128xbf16>
    %cst_12 = arith.constant dense<0.000000e+00> : vector<16x128xf32>
    %22 = tpu.matmul %16, %21, %cst_12 {dimension_numbers = #tpu.dot_dimension_numbers<[1], [0], [0], [1], [0, 0, 1, 1], [], []>} : vector<16x256xbf16>, vector<256x128xbf16>, vector<16x128xf32> -> vector<16x128xf32>
    %23 = arith.addf %20, %22 : vector<16x128xf32>
    %c0_13 = arith.constant 0 : index
    %c0_14 = arith.constant 0 : index
    %24 = vector.load %arg10[%c0_13, %c0_14] : memref<16x128xf32, #tpu.memory_space<vmem>>, vector<16x128xf32>
    tpu.vector_store %arg10[%c0_13, %c0_14], %23 {strides = array<i32>} : memref<16x128xf32, #tpu.memory_space<vmem>>, vector<16x128xf32>,
    %c0_i32_15 = arith.constant 0 : i32
    %25 = arith.cmpi eq, %arg2, %c0_i32_15 : i32
    %26 = arith.extui %25 : i1 to i32
    %c0_i32_16 = arith.constant 0 : i32
    %27 = arith.cmpi ne, %26, %c0_i32_16 : i32
    scf.if %27 {
      %c0_17 = arith.constant 0 : index
      %c0_18 = arith.constant 0 : index
      %28 = vector.load %arg10[%c0_17, %c0_18] : memref<16x128xf32, #tpu.memory_space<vmem>>, vector<16x128xf32>
      %cst_19 = arith.constant dense<0.000000e+00> : vector<128xf32>
      %29 = vector.multi_reduction <add>, %28, %cst_19 [0] : vector<16x128xf32> to vector<128xf32>
      %30 = vector.shape_cast %29 : vector<128xf32> to vector<1x128xf32>
      %31 = arith.mulf %28, %28 : vector<16x128xf32>
      %cst_20 = arith.constant dense<0.000000e+00> : vector<128xf32>
      %32 = vector.multi_reduction <add>, %31, %cst_20 [0] : vector<16x128xf32> to vector<128xf32>
      %33 = vector.shape_cast %32 : vector<128xf32> to vector<1x128xf32>
      %34 = vector.shape_cast %30 : vector<1x128xf32> to vector<1x1x128xf32>
      %35 = vector.shape_cast %34 : vector<1x1x128xf32> to vector<1x1x128xf32>
      %36 = vector.broadcast %35 : vector<1x1x128xf32> to vector<1x8x128xf32>
      %c0_21 = arith.constant 0 : index
      %c0_22 = arith.constant 0 : index
      %c0_23 = arith.constant 0 : index
      %37 = vector.load %arg8[%c0_21, %c0_22, %c0_23] : memref<1x8x128xf32, #tpu.memory_space<vmem>>, vector<1x8x128xf32>
      tpu.vector_store %arg8[%c0_21, %c0_22, %c0_23], %36 {strides = array<i32>} : memref<1x8x128xf32, #tpu.memory_space<vmem>>, vector<1x8x128xf32>,
      %38 = vector.shape_cast %33 : vector<1x128xf32> to vector<1x1x128xf32>
      %39 = vector.shape_cast %38 : vector<1x1x128xf32> to vector<1x1x128xf32>
      %40 = vector.broadcast %39 : vector<1x1x128xf32> to vector<1x8x128xf32>
      %c0_24 = arith.constant 0 : index
      %c0_25 = arith.constant 0 : index
      %c0_26 = arith.constant 0 : index
      %41 = vector.load %arg9[%c0_24, %c0_25, %c0_26] : memref<1x8x128xf32, #tpu.memory_space<vmem>>, vector<1x8x128xf32>
      tpu.vector_store %arg9[%c0_24, %c0_25, %c0_26], %40 {strides = array<i32>} : memref<1x8x128xf32, #tpu.memory_space<vmem>>, vector<1x8x128xf32>,
      %42 = arith.truncf %28 : vector<16x128xf32> to vector<16x128xbf16>
      %c0_27 = arith.constant 0 : index
      %c0_28 = arith.constant 0 : index
      %43 = vector.load %arg7[%c0_27, %c0_28] : memref<16x128xbf16, #tpu.memory_space<vmem>>, vector<16x128xbf16>
      tpu.vector_store %arg7[%c0_27, %c0_28], %42 {strides = array<i32>} : memref<16x128xbf16, #tpu.memory_space<vmem>>, vector<16x128xbf16>,
    } else {
    }
    return
  }
  func.func @transform_0(%arg0: i32, %arg1: i32, %arg2: i32) -> (i32, i32) {
    %c0_i32 = arith.constant 0 : i32
    %c0_i32_0 = arith.constant 0 : i32
    return %c0_i32, %arg2 : i32, i32
  }
  func.func @transform_1(%arg0: i32, %arg1: i32, %arg2: i32) -> (i32, i32) {
    %c0_i32 = arith.constant 0 : i32
    %c0_i32_0 = arith.constant 0 : i32
    return %c0_i32, %arg2 : i32, i32
  }
  func.func @transform_2(%arg0: i32, %arg1: i32, %arg2: i32) -> (i32, i32) {
    %c0_i32 = arith.constant 0 : i32
    return %arg0, %arg2 : i32, i32
  }
  func.func @transform_3(%arg0: i32, %arg1: i32, %arg2: i32) -> (i32, i32) {
    %c0_i32 = arith.constant 0 : i32
    return %arg2, %arg1 : i32, i32
  }
  func.func @transform_4(%arg0: i32, %arg1: i32, %arg2: i32) -> (i32, i32) {
    %c0_i32 = arith.constant 0 : i32
    return %arg0, %arg1 : i32, i32
  }
  func.func @transform_5(%arg0: i32, %arg1: i32, %arg2: i32) -> (i32, i32, i32) {
    %c0_i32 = arith.constant 0 : i32
    %c0_i32_0 = arith.constant 0 : i32
    return %arg0, %c0_i32, %arg1 : i32, i32, i32
  }
  func.func @transform_6(%arg0: i32, %arg1: i32, %arg2: i32) -> (i32, i32, i32) {
    %c0_i32 = arith.constant 0 : i32
    %c0_i32_0 = arith.constant 0 : i32
    return %arg0, %c0_i32, %arg1 : i32, i32, i32
  }
}

module attributes {stable_mosaic.version = 11 : i64} {
  func.func @_conv_mm_kernel(%arg0: i32, %arg1: i32, %arg2: i32, %arg3: memref<1x512xf32, #tpu.memory_space<vmem>>, %arg4: memref<1x512xf32, #tpu.memory_space<vmem>>, %arg5: memref<8x512xbf16, #tpu.memory_space<vmem>>, %arg6: memref<512x128xbf16, #tpu.memory_space<vmem>>, %arg7: memref<8x128xf32, #tpu.memory_space<vmem>>, %arg8: memref<8x128xf32, #tpu.memory_space<vmem>>) attributes {dimension_semantics = [#tpu.dimension_semantics<parallel>, #tpu.dimension_semantics<parallel>, #tpu.dimension_semantics<arbitrary>], iteration_bounds = array<i64: 1, 1, 1>, scalar_prefetch = 0 : i64, scratch_operands = 1 : i64, tpu.core_type = #tpu.core_type<tc>, window_params = [{transform_indices = @transform_0, window_bounds = array<i64: 1, 512>}, {transform_indices = @transform_1, window_bounds = array<i64: 1, 512>}, {transform_indices = @transform_2, window_bounds = array<i64: 8, 512>}, {transform_indices = @transform_3, window_bounds = array<i64: 512, 128>}, {transform_indices = @transform_4, window_bounds = array<i64: 8, 128>}]} {
    %c0 = arith.constant 0 : index
    %c0_0 = arith.constant 0 : index
    %0 = vector.load %arg5[%c0, %c0_0] : memref<8x512xbf16, #tpu.memory_space<vmem>>, vector<8x512xbf16>
    %1 = arith.extf %0 : vector<8x512xbf16> to vector<8x512xf32>
    %c0_1 = arith.constant 0 : index
    %c0_2 = arith.constant 0 : index
    %2 = vector.load %arg3[%c0_1, %c0_2] : memref<1x512xf32, #tpu.memory_space<vmem>>, vector<1x512xf32>
    %3 = vector.broadcast %2 : vector<1x512xf32> to vector<8x512xf32>
    %4 = arith.mulf %1, %3 : vector<8x512xf32>
    %c0_3 = arith.constant 0 : index
    %c0_4 = arith.constant 0 : index
    %5 = vector.load %arg4[%c0_3, %c0_4] : memref<1x512xf32, #tpu.memory_space<vmem>>, vector<1x512xf32>
    %6 = vector.broadcast %5 : vector<1x512xf32> to vector<8x512xf32>
    %7 = arith.addf %4, %6 : vector<8x512xf32>
    %cst = arith.constant 0.000000e+00 : f32
    %8 = vector.broadcast %cst : f32 to vector<8x512xf32>
    %9 = arith.cmpf ogt, %7, %8 : vector<8x512xf32>
    %cst_5 = arith.constant 2.000000e-01 : f32
    %10 = vector.broadcast %cst_5 : f32 to vector<8x512xf32>
    %11 = arith.mulf %10, %7 : vector<8x512xf32>
    %12 = arith.select %9, %7, %11 : vector<8x512xi1>, vector<8x512xf32>
    %13 = arith.cmpf one, %1, %1 : vector<8x512xf32>
    %cst_6 = arith.constant 0.000000e+00 : f32
    %14 = vector.broadcast %cst_6 : f32 to vector<8x512xf32>
    %15 = arith.select %13, %14, %12 : vector<8x512xi1>, vector<8x512xf32>
    %16 = arith.truncf %15 : vector<8x512xf32> to vector<8x512xbf16>
    %c0_i32 = arith.constant 0 : i32
    %17 = arith.cmpi eq, %arg2, %c0_i32 : i32
    %18 = arith.extui %17 : i1 to i32
    %c0_i32_7 = arith.constant 0 : i32
    %19 = arith.cmpi ne, %18, %c0_i32_7 : i32
    scf.if %19 {
      %cst_17 = arith.constant 0.000000e+00 : f32
      %28 = vector.broadcast %cst_17 : f32 to vector<8x128xf32>
      %c0_18 = arith.constant 0 : index
      %c0_19 = arith.constant 0 : index
      %29 = vector.load %arg8[%c0_18, %c0_19] : memref<8x128xf32, #tpu.memory_space<vmem>>, vector<8x128xf32>
      tpu.vector_store %arg8[%c0_18, %c0_19], %28 {strides = array<i32>} : memref<8x128xf32, #tpu.memory_space<vmem>>, vector<8x128xf32>,
    } else {
    }
    %c0_8 = arith.constant 0 : index
    %c0_9 = arith.constant 0 : index
    %20 = vector.load %arg8[%c0_8, %c0_9] : memref<8x128xf32, #tpu.memory_space<vmem>>, vector<8x128xf32>
    %c0_10 = arith.constant 0 : index
    %c0_11 = arith.constant 0 : index
    %21 = vector.load %arg6[%c0_10, %c0_11] : memref<512x128xbf16, #tpu.memory_space<vmem>>, vector<512x128xbf16>
    %cst_12 = arith.constant dense<0.000000e+00> : vector<8x128xf32>
    %22 = tpu.matmul %16, %21, %cst_12 {dimension_numbers = #tpu.dot_dimension_numbers<[1], [0], [0], [1], [0, 0, 1, 1], [], []>} : vector<8x512xbf16>, vector<512x128xbf16>, vector<8x128xf32> -> vector<8x128xf32>
    %23 = arith.addf %20, %22 : vector<8x128xf32>
    %c0_13 = arith.constant 0 : index
    %c0_14 = arith.constant 0 : index
    %24 = vector.load %arg8[%c0_13, %c0_14] : memref<8x128xf32, #tpu.memory_space<vmem>>, vector<8x128xf32>
    tpu.vector_store %arg8[%c0_13, %c0_14], %23 {strides = array<i32>} : memref<8x128xf32, #tpu.memory_space<vmem>>, vector<8x128xf32>,
    %c0_i32_15 = arith.constant 0 : i32
    %25 = arith.cmpi eq, %arg2, %c0_i32_15 : i32
    %26 = arith.extui %25 : i1 to i32
    %c0_i32_16 = arith.constant 0 : i32
    %27 = arith.cmpi ne, %26, %c0_i32_16 : i32
    scf.if %27 {
      %c0_17 = arith.constant 0 : index
      %c0_18 = arith.constant 0 : index
      %28 = vector.load %arg8[%c0_17, %c0_18] : memref<8x128xf32, #tpu.memory_space<vmem>>, vector<8x128xf32>
      %cst_19 = arith.constant 0.000000e+00 : f32
      %29 = vector.broadcast %cst_19 : f32 to vector<8x128xf32>
      %30 = arith.subf %29, %28 : vector<8x128xf32>
      %31 = math.exp %30 : vector<8x128xf32>
      %cst_20 = arith.constant 1.000000e+00 : f32
      %32 = vector.broadcast %cst_20 : f32 to vector<8x128xf32>
      %33 = arith.addf %32, %31 : vector<8x128xf32>
      %34 = tpu.reciprocal %33 {approx = true} : vector<8x128xf32> -> vector<8x128xf32>
      %cst_21 = arith.constant 0.000000e+00 : f32
      %cst_22 = arith.constant 1.000000e+00 : f32
      %35 = vector.broadcast %cst_21 : f32 to vector<8x128xf32>
      %36 = arith.maximumf %35, %34 : vector<8x128xf32>
      %37 = vector.broadcast %cst_22 : f32 to vector<8x128xf32>
      %38 = arith.minimumf %37, %36 : vector<8x128xf32>
      %c0_23 = arith.constant 0 : index
      %c0_24 = arith.constant 0 : index
      %39 = vector.load %arg7[%c0_23, %c0_24] : memref<8x128xf32, #tpu.memory_space<vmem>>, vector<8x128xf32>
      tpu.vector_store %arg7[%c0_23, %c0_24], %38 {strides = array<i32>} : memref<8x128xf32, #tpu.memory_space<vmem>>, vector<8x128xf32>,
    } else {
    }
    return
  }
  func.func @transform_0(%arg0: i32, %arg1: i32, %arg2: i32) -> (i32, i32) {
    %c0_i32 = arith.constant 0 : i32
    %c0_i32_0 = arith.constant 0 : i32
    return %c0_i32, %arg2 : i32, i32
  }
  func.func @transform_1(%arg0: i32, %arg1: i32, %arg2: i32) -> (i32, i32) {
    %c0_i32 = arith.constant 0 : i32
    %c0_i32_0 = arith.constant 0 : i32
    return %c0_i32, %arg2 : i32, i32
  }
  func.func @transform_2(%arg0: i32, %arg1: i32, %arg2: i32) -> (i32, i32) {
    %c0_i32 = arith.constant 0 : i32
    return %arg0, %arg2 : i32, i32
  }
  func.func @transform_3(%arg0: i32, %arg1: i32, %arg2: i32) -> (i32, i32) {
    %c0_i32 = arith.constant 0 : i32
    return %arg2, %arg1 : i32, i32
  }
  func.func @transform_4(%arg0: i32, %arg1: i32, %arg2: i32) -> (i32, i32) {
    %c0_i32 = arith.constant 0 : i32
    return %arg0, %arg1 : i32, i32
  }
}

</mosaic_0001>

<bundles_post_ra>
// kernel: d_forward.5
= control target key start
LH: loop header
LB: loop body
LE: loop exit
PB: predicated region body
PF: predicated region fallthrough
CT: control target
= control target key end

     0   :  { %s1430_s15 = smov 0   ;;  %s1432_s16 = smov 0   ;;  %s1810_s0 = inlined_call_operand.vmem [shape: f32[1,128], index: 0, kind: input, shape index: {}]   ;;  %s1811_s1 = inlined_call_operand.vmem [shape: f32[1,128], index: 1, kind: input, shape index: {}]   ;;  %s1812_s2 = inlined_call_operand.vmem [shape: bf16[512,128], index: 2, kind: input, shape index: {}]   ;;  %s1813_s3 = inlined_call_operand.vmem [shape: bf16[128,128], index: 3, kind: input, shape index: {}]   ;;  %s1814_s4 = inlined_call_operand.vmem [shape: bf16[512,128], index: 4, kind: output, shape index: {}]  }
   0x1   :  { %s1434_s17 = smov 0  }
   0x2 LB: > { %s33_s18 = sadd.s32 1, %s1399_s16  ;;  %p1030_p0 = scmp.ge.s32.totalorder %s1403_s17, 1  ;;  %s1403_s17 = sphi %s1434_s17, %s14_s17   ;;  %s1399_s16 = sphi %s1432_s16, %s1874_s16   ;;  %s1395_s15 = sphi %s1430_s15, %s1873_s15  }
   0x3   : > { %p35_p1 = scmp.ge.s32.totalorder %s33_s18, 2  ;;  %p221_p2 = scmp.lt.s32.totalorder %s1403_s17, 3 }
   0x5   : > { %s1876_s18 = smov (%p35_p1, %s33_s18), 0  ;;  %p222_p3 = pnand %p1030_p0, %p221_p2 }
   0x6   : > { %s1031_s21 = sshll.u32 (!%p222_p3), %s1395_s15, 5 }
   0x7   : > { %225 = sbr.rel (%p222_p3) target bundleno = 237 (0xed), region = 36  ;;  %p274_p4 = scmp.lt.s32.totalorder (!%p222_p3), %s1031_s21, 63 }
   0xc   : > { %v1156_v0 = vld [vmem:[%s1813_s3 + $0x38] sm:$0xff]  ;;  %v1155_v1 = vld [vmem:[%s1813_s3 + $0x30] sm:$0xff]  ;;  %s1878_s21 = smov (!%p274_p4, %s1031_s21), 63  ;;  %v1154_v2 = vld [vmem:[%s1813_s3 + $0x28] sm:$0xff] }
   0xd   : > { %648 = vmatpush.bf16.msra.mxu0 %v1156_v0  ;;  %1331 = vmatpush.bf16.msra.mxu1 %v1156_v0  ;;  %s1032_s24 = sshll.u32 %s1878_s21, 2  ;;  %v1153_v3 = vld [vmem:[%s1813_s3 + $0x20] sm:$0xff]  ;;  %v1152_v7 = vld [vmem:[%s1813_s3 + $0x18] sm:$0xff]  ;;  %v1151_v16 = vld [vmem:[%s1813_s3 + $0x10] sm:$0xff] }
   0xe   : > { %1332 = vmatpush.bf16.msra.mxu2 %v1156_v0  ;;  %1333 = vmatpush.bf16.msra.mxu3 %v1156_v0  ;;  %s1465_s29 = scalar_lea.vmem %s1812_s2, %s1032_s24  ;;  %v1480_v11 = vld [vmem:[%s1810_s0] ss:$0 sm:$0xff]  ;;  %v1150_v28 = vld [vmem:[%s1813_s3 + $0x8] sm:$0xff]  ;;  %s1783_s25 = scalar_lea.vmem %s1814_s4, %s1032_s24 }
   0xf   : > { %v1158_v4 = vld [vmem:[%s1465_s29] sm:$0xff]   ;;  %v1301_v44 = vld [vmem:[%s1465_s29 + $0x8] sm:$0xff]   ;;  %v1306_v31 = vld [vmem:[%s1465_s29 + $0x30] sm:$0xff]  }
  0x10   : > { %v1159_v5 = vunpack.c.l.bf16 %v1158_v4  ;;  %v1304_v6 = vld [vmem:[%s1465_s29 + $0x20] sm:$0xff]   ;;  %v1160_v8 = vunpack.c.h.bf16 %v1158_v4  ;;  %v1164_v49 = vunpack.c.h.bf16 %v1301_v44  ;;  %v1163_v52 = vunpack.c.l.bf16 %v1301_v44  ;;  %v1305_v53 = vld [vmem:[%s1465_s29 + $0x28] sm:$0xff]  }
  0x11   : > { %649 = vmatpush.bf16.msra.mxu0 %v1155_v1  ;;  %1334 = vmatpush.bf16.msra.mxu1 %v1155_v1  ;;  %v1308_v9 = vld [vmem:[%s1465_s29 + $0x40] sm:$0xff]   ;;  %v1175_v12 = vunpack.c.l.bf16 %v1304_v6  ;;  %v1176_v13 = vunpack.c.h.bf16 %v1304_v6  ;;  %v1309_v54 = vld [vmem:[%s1465_s29 + $0x48] sm:$0xff]   ;;  %v1179_v56 = vunpack.c.l.bf16 %v1305_v53  ;;  %v1180_v57 = vunpack.c.h.bf16 %v1305_v53 }
  0x12   : > { %1335 = vmatpush.bf16.msra.mxu2 %v1155_v1  ;;  %1336 = vmatpush.bf16.msra.mxu3 %v1155_v1  ;;  %vm436_vm0 = vcmp.ne.f32.partialorder %v1159_v5, %v1159_v5  ;;  %v1312_v10 = vld [vmem:[%s1465_s29 + $0x60] sm:$0xff]   ;;  %vm437_vm1 = vcmp.ne.f32.partialorder %v1160_v8, %v1160_v8  ;;  %v1191_v14 = vunpack.c.l.bf16 %v1308_v9  ;;  %v1192_v15 = vunpack.c.h.bf16 %v1308_v9  ;;  %v1313_v55 = vld [vmem:[%s1465_s29 + $0x68] sm:$0xff]  }
  0x13   : > { %vm1485_vm2 = vmneg %vm436_vm0  ;;  %v1207_v18 = vunpack.c.l.bf16 %v1312_v10  ;;  %v1208_v19 = vunpack.c.h.bf16 %v1312_v10  ;;  %v368_v21 = vmul.f32 %v1480_v11, %v1159_v5  ;;  %v369_v22 = vmul.f32 %v1480_v11, %v1160_v8  ;;  %v1498_v23 = vld [vmem:[%s1811_s1] ss:$0 sm:$0xff]  ;;  %v1311_v8 = vld [vmem:[%s1465_s29 + $0x58] sm:$0xff]  }
  0x14   : > { %vm1489_vm3 = vmneg %vm437_vm1  ;;  %v376_v24 = vmul.f32 %v1480_v11, %v1175_v12  ;;  %vm445_vm4 = vcmp.ne.f32.partialorder %v1176_v13, %v1176_v13  ;;  %v377_v25 = vmul.f32 %v1480_v11, %v1176_v13  ;;  %vm444_vm5 = vcmp.ne.f32.partialorder %v1175_v12, %v1175_v12  ;;  %v1149_v39 = vld [vmem:[%s1813_s3] sm:$0xff] }
  0x15   : > { %650 = vmatpush.bf16.msra.mxu0 %v1154_v2  ;;  %1337 = vmatpush.bf16.msra.mxu1 %v1154_v2  ;;  %v384_v26 = vmul.f32 %v1480_v11, %v1191_v14  ;;  %v385_v27 = vmul.f32 %v1480_v11, %v1192_v15  ;;  %vm1069_vm6 = vmpackc.low %vm1489_vm3, %vm1485_vm2  ;;  %vm453_vm7 = vcmp.ne.f32.partialorder %v1192_v15, %v1192_v15  ;;  %v1195_v58 = vunpack.c.l.bf16 %v1309_v54 }
  0x16   : > { %1338 = vmatpush.bf16.msra.mxu2 %v1154_v2  ;;  %1339 = vmatpush.bf16.msra.mxu3 %v1154_v2  ;;  %v392_v29 = vmul.f32 %v1480_v11, %v1207_v18  ;;  %v393_v30 = vmul.f32 %v1480_v11, %v1208_v19  ;;  %vm1513_vm8 = vmneg %vm445_vm4  ;;  %vm452_vm9 = vcmp.ne.f32.partialorder %v1191_v14, %v1191_v14  ;;  %v1196_v60 = vunpack.c.h.bf16 %v1309_v54 }
  0x17   : > { %v404_v32 = vadd.f32 %v1498_v23, %v368_v21  ;;  %v405_v33 = vadd.f32 %v1498_v23, %v369_v22  ;;  %vm1520_vm10 = vmneg %vm444_vm5  ;;  %vm461_vm11 = vcmp.ne.f32.partialorder %v1208_v19, %v1208_v19  ;;  %v412_v35 = vadd.f32 %v1498_v23, %v376_v24  ;;  %v1302_v21 = vld [vmem:[%s1465_s29 + $0x10] sm:$0xff]  }
  0x18   : > { %v413_v36 = vadd.f32 %v1498_v23, %v377_v25  ;;  %v420_v37 = vadd.f32 %v1498_v23, %v384_v26  ;;  %vm1527_vm12 = vmneg %vm453_vm7  ;;  %vm460_vm13 = vcmp.ne.f32.partialorder %v1207_v18, %v1207_v18  ;;  %v421_v40 = vadd.f32 %v1498_v23, %v385_v27 }
  0x19   : > { %651 = vmatpush.bf16.msra.mxu0 %v1153_v3  ;;  %1340 = vmatpush.bf16.msra.mxu1 %v1153_v3  ;;  %vm1535_vm14 = vmneg %vm452_vm9  ;;  %v428_v42 = vadd.f32 %v1498_v23, %v392_v29  ;;  %v429_v43 = vadd.f32 %v1498_v23, %v393_v30  ;;  %v1070_v47 = vpack.c.bf16 %v405_v33, %v404_v32  ;;  %v1211_v61 = vunpack.c.l.bf16 %v1313_v55  ;;  %v1310_v32 = vld [vmem:[%s1465_s29 + $0x50] sm:$0xff]  }
  0x1a   : > { %1341 = vmatpush.bf16.msra.mxu2 %v1153_v3  ;;  %1342 = vmatpush.bf16.msra.mxu3 %v1153_v3  ;;  %vm1543_vm15 = vmneg %vm461_vm11  ;;  %v1090_v48 = vpack.c.bf16 %v413_v36, %v412_v35  ;;  %v1110_v50 = vpack.c.bf16 %v421_v40, %v420_v37  ;;  %vm439_vm7 = vcmp.ne.f32.partialorder %v1164_v49, %v1164_v49  ;;  %v1212_v62 = vunpack.c.h.bf16 %v1313_v55  ;;  %v1314_v33 = vld [vmem:[%s1465_s29 + $0x70] sm:$0xff]  }
  0x1b   : > { %vm1547_vm0 = vmneg %vm460_vm13  ;;  %v1130_v51 = vpack.c.bf16 %v429_v43, %v428_v42  ;;  %vm438_vm9 = vcmp.ne.f32.partialorder %v1163_v52, %v1163_v52  ;;  %v370_v0 = vmul.f32 %v1480_v11, %v1163_v52  ;;  %v371_v1 = vmul.f32 %v1480_v11, %v1164_v49 }
  0x1c   : > { %vm1089_vm1 = vmpackc.low %vm1513_vm8, %vm1520_vm10  ;;  %vm447_vm3 = vcmp.ne.f32.partialorder %v1180_v57, %v1180_v57  ;;  %v378_v2 = vmul.f32 %v1480_v11, %v1179_v56  ;;  %v379_v3 = vmul.f32 %v1480_v11, %v1180_v57  ;;  %v386_v4 = vmul.f32 %v1480_v11, %v1195_v58 }
  0x1d   : > { %652 = vmatpush.bf16.msra.mxu0 %v1152_v7  ;;  %1343 = vmatpush.bf16.msra.mxu1 %v1152_v7  ;;  %vm1109_vm4 = vmpackc.low %vm1527_vm12, %vm1535_vm14  ;;  %v387_v5 = vmul.f32 %v1480_v11, %v1196_v60  ;;  %vm455_vm10 = vcmp.ne.f32.partialorder %v1196_v60, %v1196_v60  ;;  %v394_v6 = vmul.f32 %v1480_v11, %v1211_v61  ;;  %v1168_v27 = vunpack.c.h.bf16 %v1302_v21 }
  0x1e   : > { %1344 = vmatpush.bf16.msra.mxu2 %v1152_v7  ;;  %1345 = vmatpush.bf16.msra.mxu3 %v1152_v7  ;;  %vm1129_vm5 = vmpackc.low %vm1543_vm15, %vm1547_vm0  ;;  %v395_v7 = vmul.f32 %v1480_v11, %v1212_v62  ;;  %vm454_vm13 = vcmp.ne.f32.partialorder %v1195_v58, %v1195_v58  ;;  %v406_v9 = vadd.f32 %v1498_v23, %v370_v0  ;;  %v1167_v30 = vunpack.c.l.bf16 %v1302_v21 }
  0x1f   : > { %vm1581_vm11 = vmneg %vm439_vm7  ;;  %vm463_vm15 = vcmp.ne.f32.partialorder %v1212_v62, %v1212_v62  ;;  %v407_v12 = vadd.f32 %v1498_v23, %v371_v1  ;;  %v414_v13 = vadd.f32 %v1498_v23, %v378_v2  ;;  %v415_v14 = vadd.f32 %v1498_v23, %v379_v3  ;;  %v1303_v62 = vld [vmem:[%s1465_s29 + $0x18] sm:$0xff]  }
  0x20   : > { %vm1585_vm2 = vmneg %vm438_vm9  ;;  %v423_v17 = vadd.f32 %v1498_v23, %v387_v5  ;;  %v430_v19 = vadd.f32 %v1498_v23, %v394_v6  ;;  %v431_v20 = vadd.f32 %v1498_v23, %v395_v7  ;;  %v1183_v34 = vunpack.c.l.bf16 %v1306_v31  ;;  %v1307_v7 = vld [vmem:[%s1465_s29 + $0x38] sm:$0xff]  }
  0x21   : > { %653 = vmatpush.bf16.msra.mxu0 %v1151_v16  ;;  %1346 = vmatpush.bf16.msra.mxu1 %v1151_v16  ;;  %vm1074_vm8 = vmpackc.low %vm1581_vm11, %vm1585_vm2  ;;  %v1075_v25 = vpack.c.bf16 %v407_v12, %v406_v9  ;;  %v1095_v26 = vpack.c.bf16 %v415_v14, %v414_v13  ;;  %v1184_v35 = vunpack.c.h.bf16 %v1306_v31  ;;  %v1199_v36 = vunpack.c.l.bf16 %v1310_v32  ;;  %v1315_v9 = vld [vmem:[%s1465_s29 + $0x78] sm:$0xff]  }
  0x22   : > { %1347 = vmatpush.bf16.msra.mxu2 %v1151_v16  ;;  %1348 = vmatpush.bf16.msra.mxu3 %v1151_v16  ;;  %vm1601_vm12 = vmneg %vm447_vm3  ;;  %v422_v16 = vadd.f32 %v1498_v23, %v386_v4  ;;  %v1135_v29 = vpack.c.bf16 %v431_v20, %v430_v19  ;;  %v1200_v38 = vunpack.c.h.bf16 %v1310_v32  ;;  %v1216_v40 = vunpack.c.h.bf16 %v1314_v33 }
  0x23   : > { %vm1613_vm0 = vmneg %vm455_vm10  ;;  %vm441_vm10 = vcmp.ne.f32.partialorder %v1168_v27, %v1168_v27  ;;  %v372_v42 = vmul.f32 %v1480_v11, %v1167_v30  ;;  %v373_v43 = vmul.f32 %v1480_v11, %v1168_v27  ;;  %vm449_vm11 = vcmp.ne.f32.partialorder %v1184_v35, %v1184_v35 }
  0x24   : > { %v380_v44 = vmul.f32 %v1480_v11, %v1183_v34  ;;  %v381_v45 = vmul.f32 %v1480_v11, %v1184_v35  ;;  %vm448_vm2 = vcmp.ne.f32.partialorder %v1183_v34, %v1183_v34  ;;  %v388_v46 = vmul.f32 %v1480_v11, %v1199_v36 }
  0x25   : > { %654 = vmatpush.bf16.msra.mxu0 %v1150_v28  ;;  %1349 = vmatpush.bf16.msra.mxu1 %v1150_v28  ;;  %v397_v49 = vmul.f32 %v1480_v11, %v1216_v40  ;;  %v409_v53 = vadd.f32 %v1498_v23, %v373_v43  ;;  %v1172_v3 = vunpack.c.h.bf16 %v1303_v62  ;;  %v1171_v6 = vunpack.c.l.bf16 %v1303_v62 }
  0x26   : > { %1350 = vmatpush.bf16.msra.mxu2 %v1150_v28  ;;  %1351 = vmatpush.bf16.msra.mxu3 %v1150_v28  ;;  %v1115_v28 = vpack.c.bf16 %v423_v17, %v422_v16  ;;  %v416_v54 = vadd.f32 %v1498_v23, %v380_v44  ;;  %v417_v55 = vadd.f32 %v1498_v23, %v381_v45  ;;  %v1187_v10 = vunpack.c.l.bf16 %v1307_v7 }
  0x27   : > { %v424_v57 = vadd.f32 %v1498_v23, %v388_v46  ;;  %v1188_v12 = vunpack.c.h.bf16 %v1307_v7  ;;  %v1203_v13 = vunpack.c.l.bf16 %v1311_v8  ;;  %v1204_v15 = vunpack.c.h.bf16 %v1311_v8 }
  0x28   : > { %v1100_v2 = vpack.c.bf16 %v417_v55, %v416_v54  ;;  %v1219_v16 = vunpack.c.l.bf16 %v1315_v9  ;;  %v1220_v17 = vunpack.c.h.bf16 %v1315_v9  ;;  %v374_v19 = vmul.f32 %v1480_v11, %v1171_v6 }
  0x29   : > { %655 = vmatpush.bf16.msra.mxu0 %v1149_v39  ;;  %1352 = vmatpush.bf16.msra.mxu1 %v1149_v39  ;;  %v375_v20 = vmul.f32 %v1480_v11, %v1172_v3  ;;  %v382_v21 = vmul.f32 %v1480_v11, %v1187_v10  ;;  %v383_v22 = vmul.f32 %v1480_v11, %v1188_v12 }
  0x2a   : > { %1353 = vmatpush.bf16.msra.mxu2 %v1149_v39  ;;  %1354 = vmatpush.bf16.msra.mxu3 %v1149_v39  ;;  %v1215_v39 = vunpack.c.l.bf16 %v1314_v33  ;;  %v390_v24 = vmul.f32 %v1480_v11, %v1203_v13  ;;  %v399_v27 = vmul.f32 %v1480_v11, %v1220_v17 }
  0x2b   : > { %v411_v31 = vadd.f32 %v1498_v23, %v375_v20  ;;  %v418_v32 = vadd.f32 %v1498_v23, %v382_v21  ;;  %v419_v33 = vadd.f32 %v1498_v23, %v383_v22 }
  0x2c   : > { %1071 = vmatmul.msk.bf16.vlgmr.msra.gmra.mxu0 %vm1069_vm6, %v1070_v47  ;;  %1091 = vmatmul.msk.bf16.vlgmr.msra.gmra.mxu1 %vm1089_vm1, %v1090_v48  ;;  %vm446_vm6 = vcmp.ne.f32.partialorder %v1179_v56, %v1179_v56  ;;  %vm462_vm1 = vcmp.ne.f32.partialorder %v1211_v61, %v1211_v61  ;;  %v389_v47 = vmul.f32 %v1480_v11, %v1200_v38 }
  0x2d   : > { %1111 = vmatmul.msk.bf16.vlgmr.msra.gmra.mxu2 %vm1109_vm4, %v1110_v50  ;;  %1131 = vmatmul.msk.bf16.vlgmr.msra.gmra.mxu3 %vm1129_vm5, %v1130_v51  ;;  %vm1606_vm14 = vmneg %vm446_vm6  ;;  %v396_v48 = vmul.f32 %v1480_v11, %v1215_v39  ;;  %v408_v51 = vadd.f32 %v1498_v23, %v372_v42  ;;  %v433_v61 = vadd.f32 %v1498_v23, %v397_v49 }
  0x2e   : > { %vm1619_vm4 = vmneg %vm454_vm13  ;;  %v425_v58 = vadd.f32 %v1498_v23, %v389_v47  ;;  %v426_v34 = vadd.f32 %v1498_v23, %v390_v24  ;;  %v435_v37 = vadd.f32 %v1498_v23, %v399_v27 }
  0x2f   : > { %vm1626_vm5 = vmneg %vm463_vm15  ;;  %vm457_vm15 = vcmp.ne.f32.partialorder %v1200_v38, %v1200_v38  ;;  %v432_v60 = vadd.f32 %v1498_v23, %v396_v48  ;;  %v1080_v1 = vpack.c.bf16 %v409_v53, %v408_v51 }
  0x30   : > { %vm1630_vm7 = vmneg %vm462_vm1  ;;  %vm456_vm1 = vcmp.ne.f32.partialorder %v1199_v36, %v1199_v36  ;;  %v1120_v4 = vpack.c.bf16 %v425_v58, %v424_v57 }
  0x31   : > { %vm1094_vm9 = vmpackc.low %vm1601_vm12, %vm1606_vm14  ;;  %vm440_vm12 = vcmp.ne.f32.partialorder %v1167_v30, %v1167_v30  ;;  %v1140_v5 = vpack.c.bf16 %v433_v61, %v432_v60 }
  0x32   : > { %vm1114_vm3 = vmpackc.low %vm1613_vm0, %vm1619_vm4 }
  0x33   : > { %vm1134_vm6 = vmpackc.low %vm1626_vm5, %vm1630_vm7  ;;  %vm465_vm5 = vcmp.ne.f32.partialorder %v1216_v40, %v1216_v40 }
  0x34   : > { %vm1654_vm13 = vmneg %vm441_vm10 }
  0x35   : > { %vm1658_vm14 = vmneg %vm440_vm12 }
  0x36   : > { %vm1674_vm0 = vmneg %vm449_vm11 }
  0x37   : > { %vm1679_vm4 = vmneg %vm448_vm2 }
  0x38   : > { %vm1686_vm7 = vmneg %vm457_vm15  ;;  %vm443_vm15 = vcmp.ne.f32.partialorder %v1172_v3, %v1172_v3 }
  0x39   : > { %vm1099_vm12 = vmpackc.low %vm1674_vm0, %vm1679_vm4  ;;  %vm442_vm0 = vcmp.ne.f32.partialorder %v1171_v6, %v1171_v6 }
  0x3a   : > { %vm1731_vm4 = vmneg %vm442_vm0 }
  0x3c   : > { %1076 = vmatmul.msk.bf16.gmra.mxu0 %vm1074_vm8, %v1075_v25  ;;  %1096 = vmatmul.msk.bf16.gmra.mxu1 %vm1094_vm9, %v1095_v26  ;;  %vm1079_vm8 = vmpackc.low %vm1654_vm13, %vm1658_vm14  ;;  %vm464_vm9 = vcmp.ne.f32.partialorder %v1215_v39, %v1215_v39  ;;  %vm451_vm13 = vcmp.ne.f32.partialorder %v1188_v12, %v1188_v12  ;;  %vm450_vm14 = vcmp.ne.f32.partialorder %v1187_v10, %v1187_v10 }
  0x3d   : > { %1116 = vmatmul.msk.bf16.gmra.mxu2 %vm1114_vm3, %v1115_v28  ;;  %1136 = vmatmul.msk.bf16.gmra.mxu3 %vm1134_vm6, %v1135_v29  ;;  %vm1692_vm3 = vmneg %vm456_vm1  ;;  %v391_v25 = vmul.f32 %v1480_v11, %v1204_v15  ;;  %v398_v26 = vmul.f32 %v1480_v11, %v1219_v16  ;;  %v410_v29 = vadd.f32 %v1498_v23, %v374_v19 }
  0x3e   : > { %vm1699_vm6 = vmneg %vm465_vm5  ;;  %vm459_vm5 = vcmp.ne.f32.partialorder %v1204_v15, %v1204_v15  ;;  %v1105_v39 = vpack.c.bf16 %v419_v33, %v418_v32 }
  0x3f   : > { %vm1703_vm10 = vmneg %vm464_vm9  ;;  %vm458_vm9 = vcmp.ne.f32.partialorder %v1203_v13, %v1203_v13  ;;  %v427_v35 = vadd.f32 %v1498_v23, %v391_v25  ;;  %v434_v36 = vadd.f32 %v1498_v23, %v398_v26  ;;  %v1085_v38 = vpack.c.bf16 %v411_v31, %v410_v29 }
  0x40   : > { %vm1119_vm11 = vmpackc.low %vm1686_vm7, %vm1692_vm3 }
  0x41   : > { %vm1139_vm2 = vmpackc.low %vm1699_vm6, %vm1703_vm10  ;;  %vm467_vm6 = vcmp.ne.f32.partialorder %v1220_v17, %v1220_v17  ;;  %v1125_v40 = vpack.c.bf16 %v427_v35, %v426_v34  ;;  %v1145_v41 = vpack.c.bf16 %v435_v37, %v434_v36 }
  0x42   : > { %vm1727_vm1 = vmneg %vm443_vm15 }
  0x43   : > { %vm1747_vm7 = vmneg %vm451_vm13 }
  0x44   : > { %vm1752_vm3 = vmneg %vm450_vm14 }
  0x45   : > { %vm1759_vm10 = vmneg %vm459_vm5 }
  0x46   : > { %vm1104_vm0 = vmpackc.low %vm1747_vm7, %vm1752_vm3 }
  0x4c   : > { %1081 = vmatmul.msk.bf16.gmra.mxu0 %vm1079_vm8, %v1080_v1  ;;  %1101 = vmatmul.msk.bf16.gmra.mxu1 %vm1099_vm12, %v1100_v2  ;;  %vm1084_vm8 = vmpackc.low %vm1727_vm1, %vm1731_vm4  ;;  %vm466_vm12 = vcmp.ne.f32.partialorder %v1219_v16, %v1219_v16 }
  0x4d   : > { %1121 = vmatmul.msk.bf16.gmra.mxu2 %vm1119_vm11, %v1120_v4  ;;  %1141 = vmatmul.msk.bf16.gmra.mxu3 %vm1139_vm2, %v1140_v5  ;;  %vm1123_vm11 = vmneg %vm458_vm9 }
  0x4e   : > { %vm1142_vm2 = vmneg %vm467_vm6 }
  0x4f   : > { %vm1143_vm15 = vmneg %vm466_vm12 }
  0x50   : > { %vm1124_vm13 = vmpackc.low %vm1759_vm10, %vm1123_vm11 }
  0x51   : > { %vm1144_vm14 = vmpackc.low %vm1142_vm2, %vm1143_vm15 }
  0x5c   : > { %1086 = vmatmul.msk.bf16.gmra.mxu0 %vm1084_vm8, %v1085_v38  ;;  %1106 = vmatmul.msk.bf16.gmra.mxu1 %vm1104_vm0, %v1105_v39 }
  0x5d   : > { %1126 = vmatmul.msk.bf16.gmra.mxu2 %vm1124_vm13, %v1125_v40  ;;  %1146 = vmatmul.msk.bf16.gmra.mxu3 %vm1144_vm14, %v1145_v41 }
  0xa9   : > { %v657_v23 = vpop.f32.mrf.mxu0  ;;  %v677_v42 = vpop.f32.mrf.mxu1 }
  0xb0   : > { %v697_v43 = vpop.f32.mrf.mxu2  ;;  %v717_v44 = vpop.f32.mrf.mxu3 }
  0xb1   : > { %v659_v45 = vpop.f32.mrf.mxu0  ;;  %v679_v46 = vpop.f32.mrf.mxu1 }
  0xb2   : > { %v1224_v47 = vpack.c.bf16 %v659_v45, %v657_v23  ;;  %v1244_v48 = vpack.c.bf16 %v679_v46, %v677_v42 }
  0xb4   : > { %1225 = vst [vmem:[%s1783_s25] sm:$0xff] %v1224_v47  }
  0xb5   : > { %1319 = vst [vmem:[%s1783_s25 + $0x20] sm:$0xff] %v1244_v48  }
  0xb8   : > { %v699_v49 = vpop.f32.mrf.mxu2  ;;  %v719_v50 = vpop.f32.mrf.mxu3 }
  0xb9   : > { %v1264_v51 = vpack.c.bf16 %v699_v49, %v697_v43  ;;  %v1284_v52 = vpack.c.bf16 %v719_v50, %v717_v44  ;;  %v662_v53 = vpop.f32.mrf.mxu0  ;;  %v682_v54 = vpop.f32.mrf.mxu1 }
  0xbb   : > { %1323 = vst [vmem:[%s1783_s25 + $0x40] sm:$0xff] %v1264_v51  }
  0xbc   : > { %1327 = vst [vmem:[%s1783_s25 + $0x60] sm:$0xff] %v1284_v52  }
  0xc0   : > { %v702_v55 = vpop.f32.mrf.mxu2  ;;  %v722_v56 = vpop.f32.mrf.mxu3 }
  0xc1   : > { %v664_v57 = vpop.f32.mrf.mxu0  ;;  %v684_v58 = vpop.f32.mrf.mxu1 }
  0xc2   : > { %v1229_v59 = vpack.c.bf16 %v664_v57, %v662_v53  ;;  %v1249_v60 = vpack.c.bf16 %v684_v58, %v682_v54 }
  0xc4   : > { %1316 = vst [vmem:[%s1783_s25 + $0x8] sm:$0xff] %v1229_v59  }
  0xc5   : > { %1320 = vst [vmem:[%s1783_s25 + $0x28] sm:$0xff] %v1249_v60  }
  0xc8   : > { %v704_v61 = vpop.f32.mrf.mxu2  ;;  %v724_v62 = vpop.f32.mrf.mxu3 }
  0xc9   : > { %v1269_v63 = vpack.c.bf16 %v704_v61, %v702_v55  ;;  %v1289_v0 = vpack.c.bf16 %v724_v62, %v722_v56  ;;  %v667_v1 = vpop.f32.mrf.mxu0  ;;  %v687_v2 = vpop.f32.mrf.mxu1 }
  0xcb   : > { %1324 = vst [vmem:[%s1783_s25 + $0x48] sm:$0xff] %v1269_v63  }
  0xcc   : > { %1328 = vst [vmem:[%s1783_s25 + $0x68] sm:$0xff] %v1289_v0  }
  0xd0   : > { %v707_v3 = vpop.f32.mrf.mxu2  ;;  %v727_v4 = vpop.f32.mrf.mxu3 }
  0xd1   : > { %v669_v5 = vpop.f32.mrf.mxu0  ;;  %v689_v6 = vpop.f32.mrf.mxu1 }
  0xd2   : > { %v1234_v7 = vpack.c.bf16 %v669_v5, %v667_v1  ;;  %v1254_v8 = vpack.c.bf16 %v689_v6, %v687_v2 }
  0xd4   : > { %1317 = vst [vmem:[%s1783_s25 + $0x10] sm:$0xff] %v1234_v7  }
  0xd5   : > { %1321 = vst [vmem:[%s1783_s25 + $0x30] sm:$0xff] %v1254_v8  }
  0xd8   : > { %v709_v9 = vpop.f32.mrf.mxu2  ;;  %v729_v10 = vpop.f32.mrf.mxu3 }
  0xd9   : > { %v1274_v12 = vpack.c.bf16 %v709_v9, %v707_v3  ;;  %v1294_v13 = vpack.c.bf16 %v729_v10, %v727_v4  ;;  %v672_v14 = vpop.f32.mrf.mxu0  ;;  %v692_v15 = vpop.f32.mrf.mxu1 }
  0xdb   : > { %1325 = vst [vmem:[%s1783_s25 + $0x50] sm:$0xff] %v1274_v12  }
  0xdc   : > { %1329 = vst [vmem:[%s1783_s25 + $0x70] sm:$0xff] %v1294_v13  }
  0xe0   : > { %v712_v16 = vpop.f32.mrf.mxu2  ;;  %v732_v17 = vpop.f32.mrf.mxu3 }
  0xe1   : > { %v674_v18 = vpop.f32.mrf.mxu0  ;;  %v694_v19 = vpop.f32.mrf.mxu1 }
  0xe2   : > { %v1239_v20 = vpack.c.bf16 %v674_v18, %v672_v14  ;;  %v1259_v21 = vpack.c.bf16 %v694_v19, %v692_v15 }
  0xe4   : > { %1318 = vst [vmem:[%s1783_s25 + $0x18] sm:$0xff] %v1239_v20  }
  0xe5   : > { %1322 = vst [vmem:[%s1783_s25 + $0x38] sm:$0xff] %v1259_v21  }
  0xe8   : > { %v714_v22 = vpop.f32.mrf.mxu2  ;;  %v734_v24 = vpop.f32.mrf.mxu3 }
  0xe9   : > { %v1279_v25 = vpack.c.bf16 %v714_v22, %v712_v16  ;;  %v1299_v26 = vpack.c.bf16 %v734_v24, %v732_v17 }
  0xeb   : > { %1326 = vst [vmem:[%s1783_s25 + $0x58] sm:$0xff] %v1279_v25  }
  0xec   : > { %1330 = vst [vmem:[%s1783_s25 + $0x78] sm:$0xff] %v1299_v26  }
  0xed PF: > { %s14_s17 = sadd.s32 1, %s1403_s17   ;;  %s1873_s15 = smov %s1399_s16 }
  0xee   : > { %p11_p5 = scmp.ge.s32.totalorder %s14_s17, 4   ;;  %s1874_s16 = smov %s1876_s18 }
  0xf0   :  { %13 = sbr.rel (!%p11_p5) target bundleno = 2 (0x2), region = 83 }

// kernel: d_forward.6
= control target key start
LH: loop header
LB: loop body
LE: loop exit
PB: predicated region body
PF: predicated region fallthrough
CT: control target
= control target key end

     0   :  { %s1099_s21 = smov 0   ;;  %s1101_s22 = smov 0   ;;  %s1276_s0 = inlined_call_operand.vmem [shape: f32[1,128], index: 0, kind: input, shape index: {}]   ;;  %s1277_s1 = inlined_call_operand.vmem [shape: f32[1,128], index: 1, kind: input, shape index: {}]   ;;  %s1278_s2 = inlined_call_operand.vmem [shape: bf16[128,128], index: 2, kind: input, shape index: {}]   ;;  %s1279_s3 = inlined_call_operand.vmem [shape: bf16[128,128], index: 3, kind: input, shape index: {}]   ;;  %s1280_s4 = inlined_call_operand.vmem [shape: bf16[128,128], index: 4, kind: output, shape index: {0}]   ;;  %s1281_s5 = inlined_call_operand.vmem [shape: f32[2,8,128], index: 5, kind: output, shape index: {1}]   ;;  %s1282_s6 = inlined_call_operand.vmem [shape: f32[2,8,128], index: 6, kind: output, shape index: {2}]  }
   0x1   :  { %s1103_s23 = smov 0  }
   0x2 LB: > { %s36_s24 = sadd.s32 1, %s1058_s22  ;;  %p879_p0 = scmp.ge.s32.totalorder %s1062_s23, 1  ;;  %s1062_s23 = sphi %s1103_s23, %s17_s23   ;;  %s1058_s22 = sphi %s1101_s22, %s1302_s22   ;;  %s1054_s21 = sphi %s1099_s21, %s1301_s21  }
   0x3   : > { %p38_p1 = scmp.ge.s32.totalorder %s36_s24, 2  ;;  %p280_p2 = scmp.lt.s32.totalorder %s1062_s23, 3 }
   0x5   : > { %s1304_s24 = smov (%p38_p1, %s36_s24), 0  ;;  %p281_p3 = pnand %p879_p0, %p280_p2 }
   0x6   : > { %s880_s27 = sshll.u32 (!%p281_p3), %s1054_s21, 3  ;;  %p377_p5 = scmp.lt.s32.totalorder (!%p281_p3), %s1054_s21, 1 }
   0x7   : > { %284 = sbr.rel (%p281_p3) target bundleno = 207 (0xcf), region = 36  ;;  %p351_p4 = scmp.lt.s32.totalorder (!%p281_p3), %s880_s27, 15 }
   0xc   : > { %v947_v0 = vld [vmem:[%s1279_s3 + $0x38] sm:$0xff]  ;;  %v946_v1 = vld [vmem:[%s1279_s3 + $0x30] sm:$0xff]  ;;  %s1306_s27 = smov (!%p351_p4, %s880_s27), 15  ;;  %v945_v2 = vld [vmem:[%s1279_s3 + $0x28] sm:$0xff]  ;;  %s1308_s21 = smov (!%p377_p5, %s1054_s21), 1 }
   0xd   : > { %559 = vmatpush.bf16.msra.mxu0 %v947_v0  ;;  %990 = vmatpush.bf16.msra.mxu1 %v947_v0  ;;  %s881_s30 = sshll.u32 %s1306_s27, 2  ;;  %v1038_v3 = vld [vmem:[%s1276_s0] ss:$0 sm:$0xff]  ;;  %v943_v20 = vld [vmem:[%s1279_s3 + $0x18] sm:$0xff]  ;;  %v942_v29 = vld [vmem:[%s1279_s3 + $0x10] sm:$0xff]  ;;  %s884_s27 = sshll.u32 %s1308_s21, 3 }
   0xe   : > { %991 = vmatpush.bf16.msra.mxu2 %v947_v0  ;;  %992 = vmatpush.bf16.msra.mxu3 %v947_v0  ;;  %s357_s11 = scalar_lea.vmem %s1278_s2, %s881_s30  ;;  %v944_v11 = vld [vmem:[%s1279_s3 + $0x20] sm:$0xff]  ;;  %v941_v41 = vld [vmem:[%s1279_s3 + $0x8] sm:$0xff]  ;;  %s375_s10 = scalar_lea.vmem %s1280_s4, %s881_s30 }
   0xf   : > { %v949_v4 = vld [vmem:[%s357_s11] sm:$0xff]   ;;  %v984_v5 = vld [vmem:[%s357_s11 + $0x8] sm:$0xff]   ;;  %v985_v6 = vld [vmem:[%s357_s11 + $0x10] sm:$0xff]   ;;  %s383_s12 = scalar_lea.vmem %s1281_s5, %s884_s27  ;;  %s390_s15 = scalar_lea.vmem %s1282_s6, %s884_s27 }
  0x10   : > { %v950_v7 = vunpack.c.l.bf16 %v949_v4  ;;  %v951_v8 = vunpack.c.h.bf16 %v949_v4  ;;  %v1140_v9 = vunpack.c.l.bf16 %v984_v5  ;;  %v955_v10 = vunpack.c.h.bf16 %v984_v5  ;;  %v1039_v14 = vld [vmem:[%s1277_s1] ss:$0 sm:$0xff]  ;;  %v986_v16 = vld [vmem:[%s357_s11 + $0x18] sm:$0xff]  }
  0x11   : > { %560 = vmatpush.bf16.msra.mxu0 %v946_v1  ;;  %993 = vmatpush.bf16.msra.mxu1 %v946_v1  ;;  %v1145_v12 = vunpack.c.l.bf16 %v985_v6  ;;  %v1150_v15 = vunpack.c.h.bf16 %v985_v6  ;;  %v1157_v22 = vunpack.c.l.bf16 %v986_v16  ;;  %v1160_v25 = vunpack.c.h.bf16 %v986_v16  ;;  %v940_v52 = vld [vmem:[%s1279_s3] sm:$0xff] }
  0x12   : > { %994 = vmatpush.bf16.msra.mxu2 %v946_v1  ;;  %995 = vmatpush.bf16.msra.mxu3 %v946_v1  ;;  %v411_v13 = vmul.f32 %v1038_v3, %v950_v7  ;;  %v412_v17 = vmul.f32 %v1038_v3, %v951_v8  ;;  %v413_v18 = vmul.f32 %v1038_v3, %v1140_v9 }
  0x13   : > { %v414_v19 = vmul.f32 %v1038_v3, %v955_v10  ;;  %v415_v21 = vmul.f32 %v1038_v3, %v1145_v12  ;;  %vm455_vm0 = vcmp.ne.f32.partialorder %v950_v7, %v950_v7  ;;  %v416_v24 = vmul.f32 %v1038_v3, %v1150_v15 }
  0x14   : > { %v423_v23 = vadd.f32 %v1039_v14, %v411_v13  ;;  %v424_v26 = vadd.f32 %v1039_v14, %v412_v17  ;;  %vm456_vm1 = vcmp.ne.f32.partialorder %v951_v8, %v951_v8  ;;  %v425_v27 = vadd.f32 %v1039_v14, %v413_v18  ;;  %vm1165_vm2 = vmneg %vm455_vm0 }
  0x15   : > { %561 = vmatpush.bf16.msra.mxu0 %v945_v2  ;;  %996 = vmatpush.bf16.msra.mxu1 %v945_v2  ;;  %v426_v28 = vadd.f32 %v1039_v14, %v414_v19  ;;  %vm457_vm3 = vcmp.ne.f32.partialorder %v1140_v9, %v1140_v9  ;;  %vm458_vm4 = vcmp.ne.f32.partialorder %v955_v10, %v955_v10  ;;  %vm1171_vm6 = vmneg %vm456_vm1 }
  0x16   : > { %997 = vmatpush.bf16.msra.mxu2 %v945_v2  ;;  %998 = vmatpush.bf16.msra.mxu3 %v945_v2  ;;  %v427_v31 = vadd.f32 %v1039_v14, %v415_v21  ;;  %vm431_vm5 = vcmp.gt.f32.partialorder %v423_v23, 0.0  ;;  %v428_v33 = vadd.f32 %v1039_v14, %v416_v24  ;;  %v417_v34 = vmul.f32 %v1038_v3, %v1157_v22  ;;  %vm1187_vm13 = vmneg %vm458_vm4 }
  0x17   : > { %v418_v35 = vmul.f32 %v1038_v3, %v1160_v25  ;;  %vm432_vm7 = vcmp.gt.f32.partialorder %v424_v26, 0.0  ;;  %v439_v36 = vmul.f32 0.2, %v423_v23  ;;  %v440_v37 = vmul.f32 0.2, %v424_v26  ;;  %vm1196_vm15 = vmneg %vm457_vm3 }
  0x18   : > { %vm433_vm8 = vcmp.gt.f32.partialorder %v425_v27, 0.0  ;;  %vm434_vm9 = vcmp.gt.f32.partialorder %v426_v28, 0.0  ;;  %v441_v38 = vmul.f32 0.2, %v425_v27  ;;  %v429_v39 = vadd.f32 %v1039_v14, %v417_v34 }
  0x19   : > { %562 = vmatpush.bf16.msra.mxu0 %v944_v11  ;;  %999 = vmatpush.bf16.msra.mxu1 %v944_v11  ;;  %v430_v40 = vadd.f32 %v1039_v14, %v418_v35  ;;  %v442_v42 = vmul.f32 0.2, %v426_v28  ;;  %vm435_vm11 = vcmp.gt.f32.partialorder %v427_v31, 0.0  ;;  %v443_v43 = vmul.f32 0.2, %v427_v31 }
  0x1a   : > { %1000 = vmatpush.bf16.msra.mxu2 %v944_v11  ;;  %1001 = vmatpush.bf16.msra.mxu3 %v944_v11  ;;  %vm459_vm12 = vcmp.ne.f32.partialorder %v1145_v12, %v1145_v12  ;;  %v444_v45 = vmul.f32 0.2, %v428_v33  ;;  %v445_v46 = vmul.f32 0.2, %v429_v39  ;;  %vm436_vm0 = vcmp.gt.f32.partialorder %v428_v33, 0.0 }
  0x1b   : > { %v446_v47 = vmul.f32 0.2, %v430_v40  ;;  %vm437_vm1 = vcmp.gt.f32.partialorder %v429_v39, 0.0  ;;  %vm438_vm10 = vcmp.gt.f32.partialorder %v430_v40, 0.0  ;;  %vm462_vm4 = vcmp.ne.f32.partialorder %v1160_v25, %v1160_v25  ;;  %vm1204_vm14 = vmneg %vm459_vm12 }
  0x1c   : > { %v447_v49 = vsel %vm431_vm5, %v423_v23, %v439_v36  ;;  %v448_v50 = vsel %vm432_vm7, %v424_v26, %v440_v37  ;;  %vm461_vm3 = vcmp.ne.f32.partialorder %v1157_v22, %v1157_v22  ;;  %v449_v53 = vsel %vm433_vm8, %v425_v27, %v441_v38  ;;  %vm1229_vm8 = vmneg %vm462_vm4 }
  0x1d   : > { %563 = vmatpush.bf16.msra.mxu0 %v943_v20  ;;  %1002 = vmatpush.bf16.msra.mxu1 %v943_v20  ;;  %v450_v54 = vsel %vm434_vm9, %v426_v28, %v442_v42  ;;  %v451_v55 = vsel %vm435_vm11, %v427_v31, %v443_v43  ;;  %vm1293_vm5 = vcmp.ne.f32.partialorder %v1150_v15, %v1150_v15  ;;  %vm1233_vm9 = vmneg %vm461_vm3 }
  0x1e   : > { %1003 = vmatpush.bf16.msra.mxu2 %v943_v20  ;;  %1004 = vmatpush.bf16.msra.mxu3 %v943_v20  ;;  %vm1219_vm7 = vmneg %vm1293_vm5  ;;  %v452_v57 = vsel %vm436_vm0, %v428_v33, %v444_v45  ;;  %v453_v58 = vsel %vm437_vm1, %v429_v39, %v445_v46  ;;  %v454_v59 = vsel %vm438_vm10, %v430_v40, %v446_v47 }
  0x1f   : > { %v921_v62 = vpack.c.bf16 %v448_v50, %v447_v49  ;;  %vm925_vm11 = vmpackc.low %vm1187_vm13, %vm1196_vm15  ;;  %v926_v63 = vpack.c.bf16 %v450_v54, %v449_v53  ;;  %v931_v0 = vpack.c.bf16 %v452_v57, %v451_v55  ;;  %v936_v1 = vpack.c.bf16 %v454_v59, %v453_v58 }
  0x20   : > { %vm930_vm10 = vmpackc.low %vm1219_vm7, %vm1204_vm14 }
  0x21   : > { %564 = vmatpush.bf16.msra.mxu0 %v942_v29  ;;  %1005 = vmatpush.bf16.msra.mxu1 %v942_v29  ;;  %vm935_vm12 = vmpackc.low %vm1229_vm8, %vm1233_vm9 }
  0x22   : > { %1006 = vmatpush.bf16.msra.mxu2 %v942_v29  ;;  %1007 = vmatpush.bf16.msra.mxu3 %v942_v29  ;;  %vm1300_vm13 = vmpackc.low %vm1171_vm6, %vm1165_vm2 }
  0x25   : > { %565 = vmatpush.bf16.msra.mxu0 %v941_v41  ;;  %1008 = vmatpush.bf16.msra.mxu1 %v941_v41 }
  0x26   : > { %1009 = vmatpush.bf16.msra.mxu2 %v941_v41  ;;  %1010 = vmatpush.bf16.msra.mxu3 %v941_v41 }
  0x29   : > { %566 = vmatpush.bf16.msra.mxu0 %v940_v52  ;;  %1011 = vmatpush.bf16.msra.mxu1 %v940_v52 }
  0x2a   : > { %1012 = vmatpush.bf16.msra.mxu2 %v940_v52  ;;  %1013 = vmatpush.bf16.msra.mxu3 %v940_v52 }
  0x2c   : > { %922 = vmatmul.msk.bf16.vlgmr.msra.gmra.mxu0 %vm1300_vm13, %v921_v62  ;;  %927 = vmatmul.msk.bf16.vlgmr.msra.gmra.mxu1 %vm925_vm11, %v926_v63 }
  0x2d   : > { %932 = vmatmul.msk.bf16.vlgmr.msra.gmra.mxu2 %vm930_vm10, %v931_v0  ;;  %937 = vmatmul.msk.bf16.vlgmr.msra.gmra.mxu3 %vm935_vm12, %v936_v1 }
  0xa9   : > { %v568_v2 = vpop.f32.mrf.mxu0  ;;  %v573_v3 = vpop.f32.mrf.mxu1 }
  0xaa   : > { %v628_v8 = vmul.f32 %v568_v2, %v568_v2  ;;  %v630_v13 = vmul.f32 %v573_v3, %v573_v3 }
  0xb0   : > { %v578_v4 = vpop.f32.mrf.mxu2  ;;  %v583_v5 = vpop.f32.mrf.mxu3 }
  0xb1   : > { %v570_v6 = vpop.f32.mrf.mxu0  ;;  %v575_v7 = vpop.f32.mrf.mxu1  ;;  %v632_v19 = vmul.f32 %v578_v4, %v578_v4  ;;  %v634_v29 = vmul.f32 %v583_v5, %v583_v5 }
  0xb2   : > { %v615_v9 = vadd.f32 %v570_v6, %v568_v2  ;;  %v629_v10 = vmul.f32 %v570_v6, %v570_v6  ;;  %v967_v11 = vpack.c.bf16 %v570_v6, %v568_v2  ;;  %v972_v12 = vpack.c.bf16 %v575_v7, %v573_v3 }
  0xb3   : > { %v631_v17 = vmul.f32 %v575_v7, %v575_v7 }
  0xb4   : > { %v636_v14 = vadd.f32 %v629_v10, %v628_v8  ;;  %968 = vst [vmem:[%s375_s10] sm:$0xff] %v967_v11   ;;  %v616_v15 = vadd.f32 %v615_v9, %v573_v3 }
  0xb5   : > { %987 = vst [vmem:[%s375_s10 + $0x8] sm:$0xff] %v972_v12  }
  0xb6   : > { %v617_v16 = vadd.f32 %v616_v15, %v575_v7  ;;  %v637_v18 = vadd.f32 %v636_v14, %v630_v13 }
  0xb8   : > { %v638_v20 = vadd.f32 %v637_v18, %v631_v17  ;;  %v580_v21 = vpop.f32.mrf.mxu2  ;;  %v618_v22 = vadd.f32 %v617_v16, %v578_v4  ;;  %v585_v23 = vpop.f32.mrf.mxu3 }
  0xb9   : > { %v977_v24 = vpack.c.bf16 %v580_v21, %v578_v4  ;;  %v982_v25 = vpack.c.bf16 %v585_v23, %v583_v5  ;;  %v633_v27 = vmul.f32 %v580_v21, %v580_v21  ;;  %v635_v33 = vmul.f32 %v585_v23, %v585_v23 }
  0xba   : > { %v619_v26 = vadd.f32 %v618_v22, %v580_v21  ;;  %v639_v28 = vadd.f32 %v638_v20, %v632_v19 }
  0xbb   : > { %988 = vst [vmem:[%s375_s10 + $0x10] sm:$0xff] %v977_v24  }
  0xbc   : > { %v640_v30 = vadd.f32 %v639_v28, %v633_v27  ;;  %v620_v31 = vadd.f32 %v619_v26, %v583_v5  ;;  %989 = vst [vmem:[%s375_s10 + $0x18] sm:$0xff] %v982_v25  }
  0xbe   : > { %v621_v32 = vadd.f32 %v620_v31, %v585_v23  ;;  %v641_v34 = vadd.f32 %v640_v30, %v634_v29 }
  0xc0   : > { %v622_v35 = vrot.slane %v621_v32, 4  ;;  %v642_v36 = vadd.f32 %v641_v34, %v635_v33 }
  0xc2   : > { %v623_v37 = vadd.f32 %v622_v35, %v621_v32  ;;  %v643_v38 = vrot.slane %v642_v36, 4 }
  0xc4   : > { %v624_v39 = vrot.slane %v623_v37, 2  ;;  %v644_v40 = vadd.f32 %v643_v38, %v642_v36 }
  0xc6   : > { %v625_v41 = vadd.f32 %v624_v39, %v623_v37  ;;  %v645_v42 = vrot.slane %v644_v40, 2 }
  0xc8   : > { %v626_v43 = vrot.slane %v625_v41, 1  ;;  %v646_v44 = vadd.f32 %v645_v42, %v644_v40 }
  0xca   : > { %v627_v45 = vadd.f32 %v626_v43, %v625_v41  ;;  %v647_v46 = vrot.slane %v646_v44, 1 }
  0xcc   : > { %v648_v47 = vadd.f32 %v647_v46, %v646_v44  ;;  %649 = vst [vmem:[%s383_s12] sm:$0xff] %v627_v45 }
  0xce   : > { %650 = vst [vmem:[%s390_s15] sm:$0xff] %v648_v47 }
  0xcf PF: > { %s17_s23 = sadd.s32 1, %s1062_s23   ;;  %s1301_s21 = smov %s1058_s22 }
  0xd0   : > { %p14_p6 = scmp.ge.s32.totalorder %s17_s23, 4   ;;  %s1302_s22 = smov %s1304_s24 }
  0xd2   :  { %16 = sbr.rel (!%p14_p6) target bundleno = 2 (0x2), region = 107 }

// kernel: tile.33
= control target key start
LH: loop header
LB: loop body
LE: loop exit
PB: predicated region body
PF: predicated region fallthrough
CT: control target
= control target key end

     0   :  { %s28_s0 = inlined_call_operand.vmem [shape: f32[8], index: 0, kind: input, shape index: {}]   ;;  %s29_s1 = inlined_call_operand.vmem [shape: f32[16,8], index: 1, kind: output, shape index: {}]  }
   0x1   :  { %v4_v0 = vld [vmem:[%s28_s0] ss:$0 sm:$0xff] }
   0x2   :  { %5 = vst [vmem:[%s29_s1] sm:$0xff] %v4_v0 }
   0x3   :  { %8 = vst [vmem:[%s29_s1 + $0x8] sm:$0xff] %v4_v0 }

// kernel: tile.34
= control target key start
LH: loop header
LB: loop body
LE: loop exit
PB: predicated region body
PF: predicated region fallthrough
CT: control target
= control target key end

     0   :  { %s131_s10 = smov 120   ;;  %s132_s11 = smov 104   ;;  %vm3_vm0 = vcmask 64512   ;;  %vm9_vm1 = vcmask 1048512   ;;  %vm15_vm2 = vcmask 982912   ;;  %vm21_vm3 = vcmask 917312   ;;  %s207_s0 = inlined_call_operand.vmem [shape: f32[16,8], index: 0, kind: input, shape index: {}]   ;;  %s208_s1 = inlined_call_operand.vmem [shape: f32[1,128], index: 1, kind: output, shape index: {}]  }
   0x1   :  { %v101_v0 = vld [vmem:[%s207_s0 + $0xf] sm:$0x1]   ;;  %v103_v1 = vld [vmem:[%s207_s0 + $0xd] sm:$0x1]   ;;  %v105_v2 = vld [vmem:[%s207_s0 + $0xb] sm:$0x1]  }
   0x2   :  { %7 = vrot.lane.b32.xlu0 %v101_v0, %s131_s10  ;;  %19 = vrot.lane.b32.xlu1 %v103_v1, %s132_s11  ;;  %s133_s14 = smov 88   ;;  %v102_v3 = vld [vmem:[%s207_s0 + $0xe] sm:$0x1]   ;;  %v104_v4 = vld [vmem:[%s207_s0 + $0xc] sm:$0x1]   ;;  %s134_s19 = smov 112  }
   0x3   :  { %31 = vrot.lane.b32.xlu2 %v105_v2, %s133_s14  ;;  %s135_s20 = smov 96   ;;  %v106_v5 = vld [vmem:[%s207_s0 + $0xa] sm:$0x1]   ;;  %s136_s23 = smov 80   ;;  %v107_v6 = vld [vmem:[%s207_s0 + $0x9] sm:$0x1]  }
   0x4   :  { %v108_v7 = vld [vmem:[%s207_s0 + $0x8] sm:$0x1]   ;;  %s137_s28 = smov 72   ;;  %s138_s29 = smov 64   ;;  %v109_v8 = vld [vmem:[%s207_s0 + $0x7] sm:$0x1]  }
   0x5   :  { %s139_s3 = smov 56   ;;  %v110_v9 = vld [vmem:[%s207_s0 + $0x6] sm:$0x1]   ;;  %v111_v10 = vld [vmem:[%s207_s0 + $0x5] sm:$0x1]   ;;  %s140_s8 = smov 48  }
   0x6   :  { %s141_s9 = smov 40   ;;  %v112_v11 = vld [vmem:[%s207_s0 + $0x4] sm:$0x1]   ;;  %s142_s12 = smov 32   ;;  %v113_v12 = vld [vmem:[%s207_s0 + $0x3] sm:$0x1]  }
   0x7   :  { %v114_v13 = vld [vmem:[%s207_s0 + $0x2] sm:$0x1]   ;;  %s143_s17 = smov 24   ;;  %s144_s18 = smov 16   ;;  %v115_v14 = vld [vmem:[%s207_s0 + $0x1] sm:$0x1]  }
   0x8   :  { %s145_s21 = smov 8   ;;  %v2_v15 = vld [vmem:[%s207_s0] sm:$0x1]   ;;  %vm27_vm4 = vcmask 851712   ;;  %vm33_vm5 = vcmask 786112   ;;  %vm39_vm6 = vcmask 720512  }
   0x9   :  { %4 = vst.msk [vmem:[#allocation0] sm:$0x1] %vm3_vm0, %v2_v15   ;;  %vm45_vm7 = vcmask 654912   ;;  %vm51_vm8 = vcmask 589312   ;;  %vm57_vm9 = vcmask 523712   ;;  %vm63_vm10 = vcmask 458112  }
   0xa   :  { %13 = vrot.lane.b32.xlu0 %v102_v3, %s134_s19  ;;  %25 = vrot.lane.b32.xlu1 %v104_v4, %s135_s20  ;;  %vm69_vm11 = vcmask 392512   ;;  %vm75_vm12 = vcmask 326912   ;;  %vm81_vm13 = vcmask 261312   ;;  %vm87_vm14 = vcmask 195712  }
   0xb   :  { %37 = vrot.lane.b32.xlu2 %v106_v5, %s136_s23  ;;  %vm93_vm15 = vcmask 130112  }
  0x12   :  { %43 = vrot.lane.b32.xlu0 %v107_v6, %s137_s28  ;;  %49 = vrot.lane.b32.xlu1 %v108_v7, %s138_s29 }
  0x13   :  { %55 = vrot.lane.b32.xlu2 %v109_v8, %s139_s3 }
  0x1a   :  { %61 = vrot.lane.b32.xlu0 %v110_v9, %s140_s8  ;;  %67 = vrot.lane.b32.xlu1 %v111_v10, %s141_s9 }
  0x1b   :  { %73 = vrot.lane.b32.xlu2 %v112_v11, %s142_s12 }
  0x22   :  { %79 = vrot.lane.b32.xlu0 %v113_v12, %s143_s17  ;;  %85 = vrot.lane.b32.xlu1 %v114_v13, %s144_s18 }
  0x23   :  { %91 = vrot.lane.b32.xlu2 %v115_v14, %s145_s21 }
  0x5d   :  { %v32_v16 = vpop.permute.xlu2 %31  }
  0x65   :  { %v38_v17 = vpop.permute.xlu2 %37  }
  0x6d   :  { %v56_v18 = vpop.permute.xlu2 %55  }
  0x74   :  { %v8_v19 = vpop.permute.xlu0 %7   ;;  %v20_v20 = vpop.permute.xlu1 %19  }
  0x75   :  { %10 = vst.msk [vmem:[#allocation0] sm:$0x1] %vm9_vm1, %v8_v19   ;;  %v74_v21 = vpop.permute.xlu2 %73  }
  0x7c   :  { %v14_v22 = vpop.permute.xlu0 %13   ;;  %v26_v23 = vpop.permute.xlu1 %25  }
  0x7d   :  { %16 = vst.msk [vmem:[#allocation0] sm:$0x1] %vm15_vm2, %v14_v22   ;;  %v92_v24 = vpop.permute.xlu2 %91  }
  0x7e   :  { %22 = vst.msk [vmem:[#allocation0] sm:$0x1] %vm21_vm3, %v20_v20  }
  0x7f   :  { %28 = vst.msk [vmem:[#allocation0] sm:$0x1] %vm27_vm4, %v26_v23  }
  0x80   :  { %34 = vst.msk [vmem:[#allocation0] sm:$0x1] %vm33_vm5, %v32_v16  }
  0x81   :  { %40 = vst.msk [vmem:[#allocation0] sm:$0x1] %vm39_vm6, %v38_v17  }
  0x84   :  { %v44_v25 = vpop.permute.xlu0 %43   ;;  %v50_v26 = vpop.permute.xlu1 %49  }
  0x85   :  { %46 = vst.msk [vmem:[#allocation0] sm:$0x1] %vm45_vm7, %v44_v25  }
  0x86   :  { %52 = vst.msk [vmem:[#allocation0] sm:$0x1] %vm51_vm8, %v50_v26  }
  0x87   :  { %58 = vst.msk [vmem:[#allocation0] sm:$0x1] %vm57_vm9, %v56_v18  }
  0x8c   :  { %v62_v27 = vpop.permute.xlu0 %61   ;;  %v68_v28 = vpop.permute.xlu1 %67  }
  0x8d   :  { %64 = vst.msk [vmem:[#allocation0] sm:$0x1] %vm63_vm10, %v62_v27  }
  0x8e   :  { %70 = vst.msk [vmem:[#allocation0] sm:$0x1] %vm69_vm11, %v68_v28  }
  0x8f   :  { %76 = vst.msk [vmem:[#allocation0] sm:$0x1] %vm75_vm12, %v74_v21  }
  0x94   :  { %v80_v29 = vpop.permute.xlu0 %79   ;;  %v86_v30 = vpop.permute.xlu1 %85  }
  0x95   :  { %82 = vst.msk [vmem:[#allocation0] sm:$0x1] %vm81_vm13, %v80_v29  }
  0x96   :  { %88 = vst.msk [vmem:[#allocation0] sm:$0x1] %vm87_vm14, %v86_v30  }
  0x97   :  { %94 = vst.msk [vmem:[#allocation0] sm:$0x1] %vm93_vm15, %v92_v24  }
  0x9e   :  { %v97_v31 = vld [vmem:[#allocation0] sm:$0x1] }
  0x9f   :  { %100 = vst [vmem:[%s208_s1] sm:$0x1] %v97_v31 }

// kernel: tile.43
= control target key start
LH: loop header
LB: loop body
LE: loop exit
PB: predicated region body
PF: predicated region fallthrough
CT: control target
= control target key end

     0   :  { %s28_s0 = inlined_call_operand.vmem [shape: f32[16], index: 0, kind: input, shape index: {}]   ;;  %s29_s1 = inlined_call_operand.vmem [shape: f32[16,16], index: 1, kind: output, shape index: {}]  }
   0x1   :  { %v4_v0 = vld [vmem:[%s28_s0] ss:$0 sm:$0xff] }
   0x2   :  { %5 = vst [vmem:[%s29_s1] sm:$0xff] %v4_v0 }
   0x3   :  { %8 = vst [vmem:[%s29_s1 + $0x8] sm:$0xff] %v4_v0 }

// kernel: tile.44
= control target key start
LH: loop header
LB: loop body
LE: loop exit
PB: predicated region body
PF: predicated region fallthrough
CT: control target
= control target key end

     0   :  { %s7_s6 = smov 3  ;;  %s21_s9 = smov 3  ;;  %vm4_vm0 = vcmask 130048   ;;  %vm11_vm1 = vcmask 1048448   ;;  %vm18_vm2 = vcmask 917248   ;;  %vm25_vm3 = vcmask 786048   ;;  %s129_s0 = inlined_call_operand.vmem [shape: f32[16,16], index: 0, kind: input, shape index: {}]   ;;  %s130_s1 = inlined_call_operand.vmem [shape: f32[1,256], index: 1, kind: output, shape index: {}]  }
   0x1   :  { %v67_v0 = vld [vmem:[%s129_s0 + $0x7] ss:$8 sm:%s7_s6]   ;;  %s82_s10 = smov 112   ;;  %v69_v1 = vld [vmem:[%s129_s0 + $0x5] ss:$8 sm:%s21_s9]   ;;  %s83_s13 = smov 80  }
   0x2   :  { %9 = vrot.lane.b32.xlu0 %v67_v0, %s82_s10  ;;  %23 = vrot.lane.b32.xlu1 %v69_v1, %s83_s13  ;;  %s14_s14 = smov 3  ;;  %s28_s15 = smov 3  ;;  %vm32_vm4 = vcmask 654848   ;;  %vm39_vm5 = vcmask 523648   ;;  %vm46_vm6 = vcmask 392448   ;;  %vm53_vm7 = vcmask 261248  }
   0x3   :  { %s35_s16 = smov 3  ;;  %v68_v3 = vld [vmem:[%s129_s0 + $0x6] ss:$8 sm:%s14_s14]   ;;  %s84_s21 = smov 48   ;;  %v70_v4 = vld [vmem:[%s129_s0 + $0x4] ss:$8 sm:%s28_s15]  }
   0x4   :  { %v71_v2 = vld [vmem:[%s129_s0 + $0x3] ss:$8 sm:%s35_s16]   ;;  %s42_s24 = smov 3  ;;  %s85_s25 = smov 96  }
   0x5   :  { %37 = vrot.lane.b32.xlu2 %v71_v2, %s84_s21  ;;  %s86_s26 = smov 64   ;;  %s49_s27 = smov 3  ;;  %v72_v5 = vld [vmem:[%s129_s0 + $0x2] ss:$8 sm:%s42_s24]  }
   0x6   :  { %v73_v6 = vld [vmem:[%s129_s0 + $0x1] ss:$8 sm:%s49_s27]   ;;  %s87_s3 = smov 32   ;;  %s88_s4 = smov 16  }
   0x7   :  { %s2_s5 = smov 3 }
   0x8   :  { %v3_v7 = vld [vmem:[%s129_s0] ss:$8 sm:%s2_s5]  }
   0x9   :  { %5 = vst.msk [vmem:[#allocation0] ss:$8 sm:$0x3] %vm4_vm0, %v3_v7  }
   0xa   :  { %16 = vrot.lane.b32.xlu0 %v68_v3, %s85_s25  ;;  %30 = vrot.lane.b32.xlu1 %v70_v4, %s86_s26 }
   0xd   :  { %44 = vrot.lane.b32.xlu2 %v72_v5, %s87_s3 }
  0x12   :  { %51 = vrot.lane.b32.xlu0 %v73_v6, %s88_s4 }
  0x5f   :  { %v38_v8 = vpop.permute.xlu2 %37  }
  0x67   :  { %v45_v9 = vpop.permute.xlu2 %44  }
  0x74   :  { %v10_v10 = vpop.permute.xlu0 %9   ;;  %v24_v11 = vpop.permute.xlu1 %23  }
  0x75   :  { %12 = vst.msk [vmem:[#allocation0] ss:$8 sm:$0x3] %vm11_vm1, %v10_v10  }
  0x7c   :  { %v17_v12 = vpop.permute.xlu0 %16   ;;  %v31_v13 = vpop.permute.xlu1 %30  }
  0x7d   :  { %19 = vst.msk [vmem:[#allocation0] ss:$8 sm:$0x3] %vm18_vm2, %v17_v12  }
  0x7e   :  { %26 = vst.msk [vmem:[#allocation0] ss:$8 sm:$0x3] %vm25_vm3, %v24_v11  }
  0x7f   :  { %33 = vst.msk [vmem:[#allocation0] ss:$8 sm:$0x3] %vm32_vm4, %v31_v13  }
  0x80   :  { %40 = vst.msk [vmem:[#allocation0] ss:$8 sm:$0x3] %vm39_vm5, %v38_v8  }
  0x81   :  { %47 = vst.msk [vmem:[#allocation0] ss:$8 sm:$0x3] %vm46_vm6, %v45_v9  }
  0x84   :  { %v52_v14 = vpop.permute.xlu0 %51  }
  0x85   :  { %54 = vst.msk [vmem:[#allocation0] ss:$8 sm:$0x3] %vm53_vm7, %v52_v14  }
  0x8c   :  { %v57_v15 = vld [vmem:[#allocation0] sm:$0x1]  ;;  %v62_v16 = vld [vmem:[#allocation0 + $0x8] sm:$0x1] }
  0x8d   :  { %60 = vst [vmem:[%s130_s1] sm:$0x1] %v57_v15 }
  0x8e   :  { %74 = vst [vmem:[%s130_s1 + $0x1] sm:$0x1] %v62_v16 }

// kernel: d_forward.7
= control target key start
LH: loop header
LB: loop body
LE: loop exit
PB: predicated region body
PF: predicated region fallthrough
CT: control target
= control target key end

     0   :  { %s895_s21 = smov 0   ;;  %s897_s22 = smov 0   ;;  %s976_s0 = inlined_call_operand.vmem [shape: f32[1,128], index: 0, kind: input, shape index: {}]   ;;  %s977_s1 = inlined_call_operand.vmem [shape: f32[1,128], index: 1, kind: input, shape index: {}]   ;;  %s978_s2 = inlined_call_operand.vmem [shape: bf16[32,128], index: 2, kind: input, shape index: {}]   ;;  %s979_s3 = inlined_call_operand.vmem [shape: bf16[128,128], index: 3, kind: input, shape index: {}]   ;;  %s980_s4 = inlined_call_operand.vmem [shape: bf16[32,128], index: 4, kind: output, shape index: {0}]   ;;  %s981_s5 = inlined_call_operand.vmem [shape: f32[2,8,128], index: 5, kind: output, shape index: {1}]   ;;  %s982_s6 = inlined_call_operand.vmem [shape: f32[2,8,128], index: 6, kind: output, shape index: {2}]  }
   0x1   :  { %s899_s23 = smov 0  }
   0x2 LB: > { %s36_s24 = sadd.s32 1, %s854_s22  ;;  %p747_p0 = scmp.ge.s32.totalorder %s858_s23, 1  ;;  %s858_s23 = sphi %s899_s23, %s17_s23   ;;  %s854_s22 = sphi %s897_s22, %s984_s22   ;;  %s850_s21 = sphi %s895_s21, %s983_s21  }
   0x3   : > { %p38_p1 = scmp.ge.s32.totalorder %s36_s24, 2  ;;  %p280_p2 = scmp.lt.s32.totalorder %s858_s23, 3 }
   0x5   : > { %s986_s24 = smov (%p38_p1, %s36_s24), 0  ;;  %p281_p3 = pnand %p747_p0, %p280_p2 }
   0x6   : > { %s748_s27 = sshll.u32 (!%p281_p3), %s850_s21, 1  ;;  %p377_p5 = scmp.lt.s32.totalorder (!%p281_p3), %s850_s21, 1 }
   0x7   : > { %284 = sbr.rel (%p281_p3) target bundleno = 195 (0xc3), region = 36  ;;  %p351_p4 = scmp.lt.s32.totalorder (!%p281_p3), %s748_s27, 3 }
   0xc   : > { %v800_v0 = vld [vmem:[%s979_s3 + $0x38] sm:$0xff]  ;;  %v799_v1 = vld [vmem:[%s979_s3 + $0x30] sm:$0xff]  ;;  %s988_s27 = smov (!%p351_p4, %s748_s27), 3  ;;  %v798_v2 = vld [vmem:[%s979_s3 + $0x28] sm:$0xff]  ;;  %s990_s21 = smov (!%p377_p5, %s850_s21), 1 }
   0xd   : > { %490 = vmatpush.bf16.msra.mxu0 %v800_v0  ;;  %s749_s30 = sshll.u32 %s988_s27, 2  ;;  %v797_v4 = vld [vmem:[%s979_s3 + $0x20] sm:$0xff]  ;;  %v796_v8 = vld [vmem:[%s979_s3 + $0x18] sm:$0xff]  ;;  %v795_v12 = vld [vmem:[%s979_s3 + $0x10] sm:$0xff] }
   0xe   : > { %s357_s11 = scalar_lea.vmem %s978_s2, %s749_s30  ;;  %v834_v7 = vld [vmem:[%s976_s0] ss:$0 sm:$0xff]  ;;  %v794_v15 = vld [vmem:[%s979_s3 + $0x8] sm:$0xff]  ;;  %s375_s10 = scalar_lea.vmem %s980_s4, %s749_s30 }
   0xf   : > { %v802_v3 = vld [vmem:[%s357_s11] sm:$0xff]   ;;  %s752_s11 = sshll.u32 %s990_s21, 3 }
  0x10   : > { %v803_v5 = vunpack.c.l.bf16 %v802_v3  ;;  %v804_v6 = vunpack.c.h.bf16 %v802_v3  ;;  %v835_v11 = vld [vmem:[%s977_s1] ss:$0 sm:$0xff]  ;;  %s383_s12 = scalar_lea.vmem %s981_s5, %s752_s11  ;;  %s390_s15 = scalar_lea.vmem %s982_s6, %s752_s11 }
  0x11   : > { %491 = vmatpush.bf16.msra.mxu0 %v799_v1  ;;  %v793_v18 = vld [vmem:[%s979_s3] sm:$0xff] }
  0x12   : > { %v399_v9 = vmul.f32 %v834_v7, %v803_v5  ;;  %v400_v10 = vmul.f32 %v834_v7, %v804_v6  ;;  %vm414_vm2 = vcmp.ne.f32.partialorder %v804_v6, %v804_v6  ;;  %vm413_vm3 = vcmp.ne.f32.partialorder %v803_v5, %v803_v5 }
  0x13   : > { %vm786_vm4 = vmneg %vm414_vm2 }
  0x14   : > { %v405_v13 = vadd.f32 %v835_v11, %v399_v9  ;;  %v406_v14 = vadd.f32 %v835_v11, %v400_v10  ;;  %vm787_vm5 = vmneg %vm413_vm3 }
  0x15   : > { %492 = vmatpush.bf16.msra.mxu0 %v798_v2  ;;  %vm788_vm6 = vmpackc.low %vm786_vm4, %vm787_vm5 }
  0x16   : > { %v409_v16 = vmul.f32 0.2, %v405_v13  ;;  %v410_v17 = vmul.f32 0.2, %v406_v14  ;;  %vm407_vm0 = vcmp.gt.f32.partialorder %v405_v13, 0.0  ;;  %vm408_vm1 = vcmp.gt.f32.partialorder %v406_v14, 0.0 }
  0x18   : > { %v411_v19 = vsel %vm407_vm0, %v405_v13, %v409_v16  ;;  %v412_v20 = vsel %vm408_vm1, %v406_v14, %v410_v17 }
  0x19   : > { %493 = vmatpush.bf16.msra.mxu0 %v797_v4  ;;  %v789_v21 = vpack.c.bf16 %v412_v20, %v411_v19 }
  0x1d   : > { %494 = vmatpush.bf16.msra.mxu0 %v796_v8 }
  0x21   : > { %495 = vmatpush.bf16.msra.mxu0 %v795_v12 }
  0x25   : > { %496 = vmatpush.bf16.msra.mxu0 %v794_v15 }
  0x29   : > { %497 = vmatpush.bf16.msra.mxu0 %v793_v18 }
  0x2c   : > { %790 = vmatmul.msk.bf16.vlgmr.msra.gmra.mxu0 %vm788_vm6, %v789_v21 }
  0xa9   : > { %v499_v22 = vpop.f32.mrf.mxu0 }
  0xaa   : > { %v520_v24 = vmul.f32 %v499_v22, %v499_v22 }
  0xb1   : > { %v501_v23 = vpop.f32.mrf.mxu0 }
  0xb2   : > { %v513_v25 = vadd.f32 %v501_v23, %v499_v22  ;;  %v521_v26 = vmul.f32 %v501_v23, %v501_v23  ;;  %v808_v27 = vpack.c.bf16 %v501_v23, %v499_v22 }
  0xb4   : > { %v514_v28 = vrot.slane %v513_v25, 4  ;;  %v522_v29 = vadd.f32 %v521_v26, %v520_v24  ;;  %809 = vst [vmem:[%s375_s10] sm:$0xff] %v808_v27  }
  0xb6   : > { %v515_v30 = vadd.f32 %v514_v28, %v513_v25  ;;  %v523_v31 = vrot.slane %v522_v29, 4 }
  0xb8   : > { %v516_v32 = vrot.slane %v515_v30, 2  ;;  %v524_v33 = vadd.f32 %v523_v31, %v522_v29 }
  0xba   : > { %v517_v34 = vadd.f32 %v516_v32, %v515_v30  ;;  %v525_v35 = vrot.slane %v524_v33, 2 }
  0xbc   : > { %v518_v36 = vrot.slane %v517_v34, 1  ;;  %v526_v37 = vadd.f32 %v525_v35, %v524_v33 }
  0xbe   : > { %v519_v38 = vadd.f32 %v518_v36, %v517_v34  ;;  %v527_v39 = vrot.slane %v526_v37, 1 }
  0xc0   : > { %v528_v40 = vadd.f32 %v527_v39, %v526_v37  ;;  %529 = vst [vmem:[%s383_s12] sm:$0xff] %v519_v38 }
  0xc2   : > { %530 = vst [vmem:[%s390_s15] sm:$0xff] %v528_v40 }
  0xc3 PF: > { %s17_s23 = sadd.s32 1, %s858_s23   ;;  %s983_s21 = smov %s854_s22 }
  0xc4   : > { %p14_p6 = scmp.ge.s32.totalorder %s17_s23, 4   ;;  %s984_s22 = smov %s986_s24 }
  0xc6   :  { %16 = sbr.rel (!%p14_p6) target bundleno = 2 (0x2), region = 107 }

// kernel: tile.53
= control target key start
LH: loop header
LB: loop body
LE: loop exit
PB: predicated region body
PF: predicated region fallthrough
CT: control target
= control target key end

     0   :  { %s28_s0 = inlined_call_operand.vmem [shape: f32[32], index: 0, kind: input, shape index: {}]   ;;  %s29_s1 = inlined_call_operand.vmem [shape: f32[16,32], index: 1, kind: output, shape index: {}]  }
   0x1   :  { %v4_v0 = vld [vmem:[%s28_s0] ss:$0 sm:$0xff] }
   0x2   :  { %5 = vst [vmem:[%s29_s1] sm:$0xff] %v4_v0 }
   0x3   :  { %8 = vst [vmem:[%s29_s1 + $0x8] sm:$0xff] %v4_v0 }

// kernel: tile.54
= control target key start
LH: loop header
LB: loop body
LE: loop exit
PB: predicated region body
PF: predicated region fallthrough
CT: control target
= control target key end

     0   :  { %s56_s8 = smov 96   ;;  %s57_s11 = smov 32   ;;  %vm3_vm0 = vcmask 261120   ;;  %vm9_vm1 = vcmask 1048320   ;;  %vm15_vm2 = vcmask 785920   ;;  %vm21_vm3 = vcmask 523520   ;;  %s93_s0 = inlined_call_operand.vmem [shape: f32[16,32], index: 0, kind: input, shape index: {}]   ;;  %s94_s1 = inlined_call_operand.vmem [shape: f32[1,512], index: 1, kind: output, shape index: {}]  }
   0x1   :  { %v47_v0 = vld [vmem:[%s93_s0 + $0x3] ss:$4 sm:$0xf]   ;;  %v49_v1 = vld [vmem:[%s93_s0 + $0x1] ss:$4 sm:$0xf]  }
   0x2   :  { %7 = vrot.lane.b32.xlu0 %v47_v0, %s56_s8  ;;  %19 = vrot.lane.b32.xlu1 %v49_v1, %s57_s11  ;;  %v48_v2 = vld [vmem:[%s93_s0 + $0x2] ss:$4 sm:$0xf]   ;;  %s58_s14 = smov 64  }
   0x3   :  { %v2_v3 = vld [vmem:[%s93_s0] ss:$4 sm:$0xf]  }
   0x4   :  { %4 = vst.msk [vmem:[#allocation0] ss:$8 sm:$0xf] %vm3_vm0, %v2_v3  }
   0xa   :  { %13 = vrot.lane.b32.xlu0 %v48_v2, %s58_s14 }
  0x74   :  { %v8_v4 = vpop.permute.xlu0 %7   ;;  %v20_v5 = vpop.permute.xlu1 %19  }
  0x75   :  { %10 = vst.msk [vmem:[#allocation0] ss:$8 sm:$0xf] %vm9_vm1, %v8_v4  }
  0x7c   :  { %v14_v6 = vpop.permute.xlu0 %13  }
  0x7d   :  { %16 = vst.msk [vmem:[#allocation0] ss:$8 sm:$0xf] %vm15_vm2, %v14_v6  }
  0x7e   :  { %22 = vst.msk [vmem:[#allocation0] ss:$8 sm:$0xf] %vm21_vm3, %v20_v5  }
  0x85   :  { %v25_v7 = vld [vmem:[#allocation0] sm:$0x1]  ;;  %v30_v8 = vld [vmem:[#allocation0 + $0x8] sm:$0x1]  ;;  %v36_v9 = vld [vmem:[#allocation0 + $0x10] sm:$0x1] }
  0x86   :  { %28 = vst [vmem:[%s94_s1] sm:$0x1] %v25_v7  ;;  %v42_v10 = vld [vmem:[#allocation0 + $0x18] sm:$0x1] }
  0x87   :  { %50 = vst [vmem:[%s94_s1 + $0x1] sm:$0x1] %v30_v8 }
  0x88   :  { %51 = vst [vmem:[%s94_s1 + $0x2] sm:$0x1] %v36_v9 }
  0x89   :  { %52 = vst [vmem:[%s94_s1 + $0x3] sm:$0x1] %v42_v10 }

// kernel: d_forward.8
= control target key start
LH: loop header
LB: loop body
LE: loop exit
PB: predicated region body
PF: predicated region fallthrough
CT: control target
= control target key end

     0   :  { %s1056_s21 = smov 0   ;;  %s1058_s22 = smov 0   ;;  %s1170_s0 = inlined_call_operand.vmem [shape: f32[1,256], index: 0, kind: input, shape index: {}]   ;;  %s1171_s1 = inlined_call_operand.vmem [shape: f32[1,256], index: 1, kind: input, shape index: {}]   ;;  %s1172_s2 = inlined_call_operand.vmem [shape: bf16[32,256], index: 2, kind: input, shape index: {}]   ;;  %s1173_s3 = inlined_call_operand.vmem [shape: bf16[256,128], index: 3, kind: input, shape index: {}]   ;;  %s1174_s4 = inlined_call_operand.vmem [shape: bf16[32,128], index: 4, kind: output, shape index: {0}]   ;;  %s1175_s5 = inlined_call_operand.vmem [shape: f32[2,8,128], index: 5, kind: output, shape index: {1}]   ;;  %s1176_s6 = inlined_call_operand.vmem [shape: f32[2,8,128], index: 6, kind: output, shape index: {2}]  }
   0x1   :  { %s1060_s23 = smov 0  }
   0x2 LB: > { %s36_s24 = sadd.s32 1, %s1015_s22  ;;  %p867_p0 = scmp.ge.s32.totalorder %s1019_s23, 1  ;;  %s1019_s23 = sphi %s1060_s23, %s17_s23   ;;  %s1015_s22 = sphi %s1058_s22, %s1182_s22   ;;  %s1011_s21 = sphi %s1056_s21, %s1181_s21  }
   0x3   : > { %p38_p1 = scmp.ge.s32.totalorder %s36_s24, 2  ;;  %p287_p2 = scmp.lt.s32.totalorder %s1019_s23, 3 }
   0x5   : > { %s1184_s24 = smov (%p38_p1, %s36_s24), 0  ;;  %p288_p3 = pnand %p867_p0, %p287_p2 }
   0x6   : > { %s868_s29 = sshll.u32 (!%p288_p3), %s1011_s21, 1  ;;  %p395_p5 = scmp.lt.s32.totalorder (!%p288_p3), %s1011_s21, 1 }
   0x7   : > { %291 = sbr.rel (%p288_p3) target bundleno = 198 (0xc6), region = 36  ;;  %p367_p4 = scmp.lt.s32.totalorder (!%p288_p3), %s868_s29, 3 }
   0xc   : > { %v959_v0 = vld [vmem:[%s1173_s3 + $0x38] sm:$0xff]  ;;  %v958_v2 = vld [vmem:[%s1173_s3 + $0x30] sm:$0xff]  ;;  %s1186_s29 = smov (!%p367_p4, %s868_s29), 3  ;;  %v957_v4 = vld [vmem:[%s1173_s3 + $0x28] sm:$0xff]  ;;  %s1188_s21 = smov (!%p395_p5, %s1011_s21), 1 }
   0xd   : > { %v967_v1 = vld [vmem:[%s1173_s3 + $0x78] sm:$0xff]  ;;  %593 = vmatpush.bf16.msra.mxu0 %v959_v0  ;;  %v966_v3 = vld [vmem:[%s1173_s3 + $0x70] sm:$0xff]  ;;  %s951_s10 = sshll.u32 %s1186_s29, 3  ;;  %v965_v5 = vld [vmem:[%s1173_s3 + $0x68] sm:$0xff]  ;;  %s872_s27 = sshll.u32 %s1186_s29, 2 }
   0xe   : > { %607 = vmatpush.bf16.msra.mxu1 %v967_v1  ;;  %s374_s17 = scalar_lea.vmem %s1172_s2, %s951_s10  ;;  %v415_v6 = vld [vmem:[%s1170_s0] sm:$0x3]  ;;  %v955_v20 = vld [vmem:[%s1173_s3 + $0x18] sm:$0xff]  ;;  %v954_v27 = vld [vmem:[%s1173_s3 + $0x10] sm:$0xff]  ;;  %s393_s7 = scalar_lea.vmem %s1174_s4, %s872_s27 }
   0xf   : > { %v409_v7 = vld [vmem:[%s374_s17] sm:$0xff]  ;;  %v410_v8 = vld [vmem:[%s374_s17 + $0x8] sm:$0xff]  ;;  %v417_v10 = vperm.slane %v415_v6, 0  ;;  %v418_v17 = vperm.slane %v415_v6, 1  ;;  %v963_v21 = vld [vmem:[%s1173_s3 + $0x58] sm:$0xff]  ;;  %s873_s29 = sshll.u32 %s1188_s21, 3 }
  0x10   : > { %v411_v9 = vunpack.c.l.bf16 %v409_v7  ;;  %v956_v11 = vld [vmem:[%s1173_s3 + $0x20] sm:$0xff]  ;;  %v413_v13 = vunpack.c.l.bf16 %v410_v8  ;;  %v412_v15 = vunpack.c.h.bf16 %v409_v7  ;;  %v414_v16 = vunpack.c.h.bf16 %v410_v8  ;;  %v962_v28 = vld [vmem:[%s1173_s3 + $0x50] sm:$0xff]  ;;  %v953_v32 = vld [vmem:[%s1173_s3 + $0x8] sm:$0xff]  ;;  %s401_s10 = scalar_lea.vmem %s1175_s5, %s873_s29  ;;  %s408_s13 = scalar_lea.vmem %s1176_s6, %s873_s29 }
  0x11   : > { %594 = vmatpush.bf16.msra.mxu0 %v958_v2  ;;  %v964_v12 = vld [vmem:[%s1173_s3 + $0x60] sm:$0xff]  ;;  %v961_v33 = vld [vmem:[%s1173_s3 + $0x48] sm:$0xff] }
  0x12   : > { %608 = vmatpush.bf16.msra.mxu1 %v966_v3  ;;  %v425_v14 = vld [vmem:[%s1171_s1] sm:$0x3]  ;;  %v421_v18 = vmul.f32 %v417_v10, %v411_v9  ;;  %v423_v22 = vmul.f32 %v417_v10, %v413_v13  ;;  %v422_v23 = vmul.f32 %v418_v17, %v412_v15  ;;  %v424_v24 = vmul.f32 %v418_v17, %v414_v16 }
  0x13   : > { %v427_v19 = vperm.slane %v425_v14, 0  ;;  %v428_v25 = vperm.slane %v425_v14, 1  ;;  %vm447_vm1 = vcmp.ne.f32.partialorder %v411_v9, %v411_v9  ;;  %vm449_vm2 = vcmp.ne.f32.partialorder %v413_v13, %v413_v13  ;;  %v952_v41 = vld [vmem:[%s1173_s3] sm:$0xff] }
  0x14   : > { %vm450_vm6 = vcmp.ne.f32.partialorder %v414_v16, %v414_v16  ;;  %vm1131_vm7 = vmneg %vm447_vm1  ;;  %vm448_vm8 = vcmp.ne.f32.partialorder %v412_v15, %v412_v15  ;;  %v960_v42 = vld [vmem:[%s1173_s3 + $0x40] sm:$0xff] }
  0x15   : > { %595 = vmatpush.bf16.msra.mxu0 %v957_v4  ;;  %v431_v26 = vadd.f32 %v427_v19, %v421_v18  ;;  %v433_v29 = vadd.f32 %v427_v19, %v423_v22  ;;  %v432_v30 = vadd.f32 %v428_v25, %v422_v23  ;;  %v434_v31 = vadd.f32 %v428_v25, %v424_v24  ;;  %vm1135_vm9 = vmneg %vm449_vm2 }
  0x16   : > { %609 = vmatpush.bf16.msra.mxu1 %v965_v5  ;;  %vm944_vm10 = vmneg %vm450_vm6 }
  0x17   : > { %vm435_vm0 = vcmp.gt.f32.partialorder %v431_v26, 0.0  ;;  %v439_v34 = vmul.f32 0.2, %v431_v26  ;;  %v441_v35 = vmul.f32 0.2, %v433_v29  ;;  %vm437_vm3 = vcmp.gt.f32.partialorder %v433_v29, 0.0  ;;  %vm945_vm11 = vmneg %vm448_vm8 }
  0x18   : > { %v440_v36 = vmul.f32 0.2, %v432_v30  ;;  %v442_v37 = vmul.f32 0.2, %v434_v31  ;;  %vm436_vm4 = vcmp.gt.f32.partialorder %v432_v30, 0.0  ;;  %vm438_vm5 = vcmp.gt.f32.partialorder %v434_v31, 0.0  ;;  %vm941_vm12 = vmpackc.low %vm1135_vm9, %vm1131_vm7 }
  0x19   : > { %596 = vmatpush.bf16.msra.mxu0 %v956_v11  ;;  %v443_v39 = vsel %vm435_vm0, %v431_v26, %v439_v34  ;;  %v445_v43 = vsel %vm437_vm3, %v433_v29, %v441_v35  ;;  %vm946_vm13 = vmpackc.low %vm944_vm10, %vm945_vm11 }
  0x1a   : > { %610 = vmatpush.bf16.msra.mxu1 %v964_v12  ;;  %v444_v44 = vsel %vm436_vm4, %v432_v30, %v440_v36  ;;  %v446_v45 = vsel %vm438_vm5, %v434_v31, %v442_v37  ;;  %v942_v46 = vpack.c.bf16 %v445_v43, %v443_v39 }
  0x1b   : > { %v947_v47 = vpack.c.bf16 %v446_v45, %v444_v44 }
  0x1d   : > { %597 = vmatpush.bf16.msra.mxu0 %v955_v20 }
  0x1e   : > { %611 = vmatpush.bf16.msra.mxu1 %v963_v21 }
  0x21   : > { %598 = vmatpush.bf16.msra.mxu0 %v954_v27 }
  0x22   : > { %612 = vmatpush.bf16.msra.mxu1 %v962_v28 }
  0x25   : > { %599 = vmatpush.bf16.msra.mxu0 %v953_v32 }
  0x26   : > { %613 = vmatpush.bf16.msra.mxu1 %v961_v33 }
  0x29   : > { %600 = vmatpush.bf16.msra.mxu0 %v952_v41 }
  0x2a   : > { %614 = vmatpush.bf16.msra.mxu1 %v960_v42 }
  0x2c   : > { %943 = vmatmul.msk.bf16.vlgmr.msra.gmra.mxu0 %vm941_vm12, %v942_v46 }
  0x2d   : > { %948 = vmatmul.msk.bf16.vlgmr.msra.gmra.mxu1 %vm946_vm13, %v947_v47 }
  0xa9   : > { %v602_v48 = vpop.f32.mrf.mxu0 }
  0xaa   : > { %v616_v49 = vpop.f32.mrf.mxu1 }
  0xab   : > { %v617_v50 = vadd.f32 %v616_v49, %v602_v48 }
  0xad   : > { %v637_v54 = vmul.f32 %v617_v50, %v617_v50 }
  0xb1   : > { %v604_v51 = vpop.f32.mrf.mxu0 }
  0xb2   : > { %v618_v52 = vpop.f32.mrf.mxu1 }
  0xb3   : > { %v619_v53 = vadd.f32 %v618_v52, %v604_v51 }
  0xb5   : > { %v630_v55 = vadd.f32 %v619_v53, %v617_v50  ;;  %v638_v56 = vmul.f32 %v619_v53, %v619_v53  ;;  %v971_v57 = vpack.c.bf16 %v619_v53, %v617_v50 }
  0xb7   : > { %v631_v58 = vrot.slane %v630_v55, 4  ;;  %v639_v59 = vadd.f32 %v638_v56, %v637_v54  ;;  %972 = vst [vmem:[%s393_s7] sm:$0xff] %v971_v57  }
  0xb9   : > { %v632_v60 = vadd.f32 %v631_v58, %v630_v55  ;;  %v640_v61 = vrot.slane %v639_v59, 4 }
  0xbb   : > { %v633_v62 = vrot.slane %v632_v60, 2  ;;  %v641_v63 = vadd.f32 %v640_v61, %v639_v59 }
  0xbd   : > { %v634_v0 = vadd.f32 %v633_v62, %v632_v60  ;;  %v642_v1 = vrot.slane %v641_v63, 2 }
  0xbf   : > { %v635_v2 = vrot.slane %v634_v0, 1  ;;  %v643_v3 = vadd.f32 %v642_v1, %v641_v63 }
  0xc1   : > { %v636_v4 = vadd.f32 %v635_v2, %v634_v0  ;;  %v644_v5 = vrot.slane %v643_v3, 1 }
  0xc3   : > { %v645_v6 = vadd.f32 %v644_v5, %v643_v3  ;;  %646 = vst [vmem:[%s401_s10] sm:$0xff] %v636_v4 }
  0xc5   : > { %647 = vst [vmem:[%s408_s13] sm:$0xff] %v645_v6 }
  0xc6 PF: > { %s17_s23 = sadd.s32 1, %s1019_s23   ;;  %s1181_s21 = smov %s1015_s22 }
  0xc7   : > { %p14_p6 = scmp.ge.s32.totalorder %s17_s23, 4   ;;  %s1182_s22 = smov %s1184_s24 }
  0xc9   :  { %16 = sbr.rel (!%p14_p6) target bundleno = 2 (0x2), region = 107 }

// kernel: d_forward.9
= control target key start
LH: loop header
LB: loop body
LE: loop exit
PB: predicated region body
PF: predicated region fallthrough
CT: control target
= control target key end

     0   :  { %s778_s3 = inlined_call_operand.vmem [shape: bf16[512,128], index: 3, kind: input, shape index: {}]   ;;  %s779_s2 = inlined_call_operand.vmem [shape: bf16[8,512], index: 2, kind: input, shape index: {}]   ;;  %s780_s0 = inlined_call_operand.vmem [shape: f32[1,512], index: 0, kind: input, shape index: {}]   ;;  %s781_s1 = inlined_call_operand.vmem [shape: f32[1,512], index: 1, kind: input, shape index: {}]   ;;  %s782_s4 = inlined_call_operand.vmem [shape: f32[8,128], index: 4, kind: output, shape index: {}]  }
   0x1   :  { %v562_v0 = vld [vmem:[%s778_s3 + $0x38] sm:$0xff]  ;;  %v561_v4 = vld [vmem:[%s778_s3 + $0x30] sm:$0xff]  ;;  %v560_v8 = vld [vmem:[%s778_s3 + $0x28] sm:$0xff] }
   0x2   :  { %v570_v1 = vld [vmem:[%s778_s3 + $0x78] sm:$0xff]  ;;  %337 = vmatpush.bf16.msra.mxu0 %v562_v0  ;;  %v569_v5 = vld [vmem:[%s778_s3 + $0x70] sm:$0xff]  ;;  %v568_v9 = vld [vmem:[%s778_s3 + $0x68] sm:$0xff] }
   0x3   :  { %v578_v2 = vld [vmem:[%s778_s3 + $0xb8] sm:$0xff]  ;;  %350 = vmatpush.bf16.msra.mxu1 %v570_v1  ;;  %v577_v6 = vld [vmem:[%s778_s3 + $0xb0] sm:$0xff]  ;;  %v576_v10 = vld [vmem:[%s778_s3 + $0xa8] sm:$0xff] }
   0x4   :  { %v586_v3 = vld [vmem:[%s778_s3 + $0xf8] sm:$0xff]  ;;  %363 = vmatpush.bf16.msra.mxu2 %v578_v2  ;;  %v585_v7 = vld [vmem:[%s778_s3 + $0xf0] sm:$0xff]  ;;  %v584_v11 = vld [vmem:[%s778_s3 + $0xe8] sm:$0xff] }
   0x5   :  { %376 = vmatpush.bf16.msra.mxu3 %v586_v3  ;;  %v559_v12 = vld [vmem:[%s778_s3 + $0x20] sm:$0xff]  ;;  %v18_v21 = vld [vmem:[%s779_s2 + $0x8] sm:$0xff]  ;;  %v558_v27 = vld [vmem:[%s778_s3 + $0x18] sm:$0xff] }
   0x6   :  { %338 = vmatpush.bf16.msra.mxu0 %v561_v4  ;;  %v567_v13 = vld [vmem:[%s778_s3 + $0x60] sm:$0xff]  ;;  %v678_v25 = vunpack.c.l.bf16 %v18_v21  ;;  %v566_v28 = vld [vmem:[%s778_s3 + $0x58] sm:$0xff]  ;;  %v22_v32 = vunpack.c.h.bf16 %v18_v21  ;;  %v557_v40 = vld [vmem:[%s778_s3 + $0x10] sm:$0xff] }
   0x7   :  { %351 = vmatpush.bf16.msra.mxu1 %v569_v5  ;;  %v575_v14 = vld [vmem:[%s778_s3 + $0xa0] sm:$0xff]  ;;  %v574_v33 = vld [vmem:[%s778_s3 + $0x98] sm:$0xff]  ;;  %v565_v41 = vld [vmem:[%s778_s3 + $0x50] sm:$0xff] }
   0x8   :  { %364 = vmatpush.bf16.msra.mxu2 %v577_v6  ;;  %v583_v15 = vld [vmem:[%s778_s3 + $0xe0] sm:$0xff]  ;;  %v582_v34 = vld [vmem:[%s778_s3 + $0xd8] sm:$0xff]  ;;  %v573_v44 = vld [vmem:[%s778_s3 + $0x90] sm:$0xff]  ;;  %vm65_vm6 = vcmp.ne.f32.partialorder %v678_v25, %v678_v25  ;;  %vm66_vm9 = vcmp.ne.f32.partialorder %v22_v32, %v22_v32 }
   0x9   :  { %377 = vmatpush.bf16.msra.mxu3 %v585_v7  ;;  %v17_v16 = vld [vmem:[%s779_s2] sm:$0xff]  ;;  %v581_v45 = vld [vmem:[%s778_s3 + $0xd0] sm:$0xff]  ;;  %v556_v48 = vld [vmem:[%s778_s3 + $0x8] sm:$0xff] }
   0xa   :  { %339 = vmatpush.bf16.msra.mxu0 %v560_v8  ;;  %v19_v17 = vunpack.c.l.bf16 %v17_v16  ;;  %v23_v18 = vld [vmem:[%s780_s0] sm:$0xf]  ;;  %v673_v20 = vunpack.c.h.bf16 %v17_v16  ;;  %v564_v49 = vld [vmem:[%s778_s3 + $0x48] sm:$0xff]  ;;  %vm752_vm11 = vmneg %vm65_vm6 }
   0xb   :  { %352 = vmatpush.bf16.msra.mxu1 %v568_v9  ;;  %v37_v19 = vld [vmem:[%s781_s1] sm:$0xf]  ;;  %v25_v22 = vperm.slane %v23_v18, 0  ;;  %v26_v23 = vperm.slane %v23_v18, 1  ;;  %v27_v26 = vperm.slane %v23_v18, 2  ;;  %v28_v37 = vperm.slane %v23_v18, 3  ;;  %vm757_vm12 = vmneg %vm66_vm9 }
   0xc   :  { %365 = vmatpush.bf16.msra.mxu2 %v576_v10  ;;  %v39_v24 = vperm.slane %v37_v19, 0  ;;  %v40_v31 = vperm.slane %v37_v19, 1  ;;  %v41_v36 = vperm.slane %v37_v19, 2  ;;  %v42_v38 = vperm.slane %v37_v19, 3  ;;  %v572_v50 = vld [vmem:[%s778_s3 + $0x88] sm:$0xff]  ;;  %v555_v57 = vld [vmem:[%s778_s3] sm:$0xff]  ;;  %vm547_vm14 = vmpackc.low %vm752_vm11, %vm752_vm11 }
   0xd   :  { %378 = vmatpush.bf16.msra.mxu3 %v584_v11  ;;  %v33_v29 = vmul.f32 %v25_v22, %v19_v17  ;;  %v34_v30 = vmul.f32 %v26_v23, %v673_v20  ;;  %v35_v35 = vmul.f32 %v27_v26, %v678_v25  ;;  %v36_v39 = vmul.f32 %v28_v37, %v22_v32  ;;  %v580_v51 = vld [vmem:[%s778_s3 + $0xc8] sm:$0xff]  ;;  %v563_v58 = vld [vmem:[%s778_s3 + $0x40] sm:$0xff]  ;;  %vm552_vm15 = vmpackc.low %vm757_vm12, %vm757_vm12 }
   0xe   :  { %340 = vmatpush.bf16.msra.mxu0 %v559_v12  ;;  %vm63_vm0 = vcmp.ne.f32.partialorder %v19_v17, %v19_v17  ;;  %vm64_vm2 = vcmp.ne.f32.partialorder %v673_v20, %v673_v20  ;;  %v571_v62 = vld [vmem:[%s778_s3 + $0x80] sm:$0xff] }
   0xf   :  { %353 = vmatpush.bf16.msra.mxu1 %v567_v13  ;;  %v47_v42 = vadd.f32 %v39_v24, %v33_v29  ;;  %v48_v43 = vadd.f32 %v40_v31, %v34_v30  ;;  %v49_v46 = vadd.f32 %v41_v36, %v35_v35  ;;  %v50_v47 = vadd.f32 %v42_v38, %v36_v39  ;;  %vm718_vm1 = vmneg %vm63_vm0  ;;  %v579_v63 = vld [vmem:[%s778_s3 + $0xc0] sm:$0xff] }
  0x10   :  { %366 = vmatpush.bf16.msra.mxu2 %v575_v14  ;;  %vm537_vm8 = vmpackc.low %vm718_vm1, %vm718_vm1 }
  0x11   :  { %379 = vmatpush.bf16.msra.mxu3 %v583_v15  ;;  %v55_v52 = vmul.f32 0.2, %v47_v42  ;;  %v56_v54 = vmul.f32 0.2, %v48_v43  ;;  %vm51_vm3 = vcmp.gt.f32.partialorder %v47_v42, 0.0  ;;  %vm52_vm4 = vcmp.gt.f32.partialorder %v48_v43, 0.0  ;;  %vm738_vm10 = vmneg %vm64_vm2 }
  0x12   :  { %341 = vmatpush.bf16.msra.mxu0 %v558_v27  ;;  %v57_v55 = vmul.f32 0.2, %v49_v46  ;;  %v58_v56 = vmul.f32 0.2, %v50_v47  ;;  %vm53_vm5 = vcmp.gt.f32.partialorder %v49_v46, 0.0  ;;  %vm54_vm7 = vcmp.gt.f32.partialorder %v50_v47, 0.0  ;;  %vm542_vm13 = vmpackc.low %vm738_vm10, %vm738_vm10 }
  0x13   :  { %354 = vmatpush.bf16.msra.mxu1 %v566_v28  ;;  %v59_v59 = vsel %vm51_vm3, %v47_v42, %v55_v52  ;;  %v60_v60 = vsel %vm52_vm4, %v48_v43, %v56_v54 }
  0x14   :  { %367 = vmatpush.bf16.msra.mxu2 %v574_v33  ;;  %v61_v0 = vsel %vm53_vm5, %v49_v46, %v57_v55  ;;  %v62_v2 = vsel %vm54_vm7, %v50_v47, %v58_v56  ;;  %v538_v4 = vpack.c.bf16 %v59_v59, %v59_v59  ;;  %v543_v5 = vpack.c.bf16 %v60_v60, %v60_v60 }
  0x15   :  { %380 = vmatpush.bf16.msra.mxu3 %v582_v34  ;;  %v548_v6 = vpack.c.bf16 %v61_v0, %v61_v0  ;;  %v553_v7 = vpack.c.bf16 %v62_v2, %v62_v2 }
  0x16   :  { %342 = vmatpush.bf16.msra.mxu0 %v557_v40 }
  0x17   :  { %355 = vmatpush.bf16.msra.mxu1 %v565_v41 }
  0x18   :  { %368 = vmatpush.bf16.msra.mxu2 %v573_v44 }
  0x19   :  { %381 = vmatpush.bf16.msra.mxu3 %v581_v45 }
  0x1a   :  { %343 = vmatpush.bf16.msra.mxu0 %v556_v48 }
  0x1b   :  { %356 = vmatpush.bf16.msra.mxu1 %v564_v49 }
  0x1c   :  { %369 = vmatpush.bf16.msra.mxu2 %v572_v50 }
  0x1d   :  { %382 = vmatpush.bf16.msra.mxu3 %v580_v51 }
  0x1e   :  { %344 = vmatpush.bf16.msra.mxu0 %v555_v57 }
  0x1f   :  { %357 = vmatpush.bf16.msra.mxu1 %v563_v58 }
  0x20   :  { %370 = vmatpush.bf16.msra.mxu2 %v571_v62 }
  0x21   :  { %383 = vmatpush.bf16.msra.mxu3 %v579_v63  ;;  %539 = vmatmul.msk.bf16.vlgmr.msra.gmra.mxu0 %vm537_vm8, %v538_v4 }
  0x22   :  { %544 = vmatmul.msk.bf16.vlgmr.msra.gmra.mxu1 %vm542_vm13, %v543_v5 }
  0x23   :  { %549 = vmatmul.msk.bf16.vlgmr.msra.gmra.mxu2 %vm547_vm14, %v548_v6 }
  0x24   :  { %554 = vmatmul.msk.bf16.vlgmr.msra.gmra.mxu3 %vm552_vm15, %v553_v7 }
  0x9e   :  { %v346_v8 = vpop.f32.mrf.mxu0 }
  0x9f   :  { %v359_v9 = vpop.f32.mrf.mxu1 }
  0xa0   :  { %v360_v10 = vadd.f32 %v359_v9, %v346_v8 }
  0xa6   :  { %v372_v11 = vpop.f32.mrf.mxu2  ;;  %v348_v14 = vpop.f32.mrf.mxu0 }
  0xa7   :  { %v385_v12 = vpop.f32.mrf.mxu3  ;;  %v373_v13 = vadd.f32 %v372_v11, %v360_v10  ;;  %v361_v15 = vpop.f32.mrf.mxu1 }
  0xa9   :  { %v386_v16 = vadd.f32 %v385_v12, %v373_v13 }
  0xab   :  { %v395_v17 = vsub.f32 0.0, %v386_v16 }
  0xad   :  { %v396_v18 = vmul.f32 1.442695, %v395_v17 }
  0xae   :  { %v374_v19 = vpop.f32.mrf.mxu2 }
  0xaf   :  { %v387_v20 = vpop.f32.mrf.mxu3  ;;  %587 = vpow2.f32 %v396_v18 }
  0xb5   :  { %v588_v21 = vpop.eup %587 }
  0xb6   :  { %v398_v22 = vadd.f32 1.0, %v588_v21 }
  0xb8   :  { %589 = vrcp.f32 %v398_v22 }
  0xbe   :  { %v590_v23 = vpop.eup %589 }
  0xbf   :  { %v400_v24 = vmax.f32 %v590_v23, 0.0 }
  0xc1   :  { %v401_v25 = vmin.f32 %v400_v24, 1.0 }
  0xc3   :  { %402 = vst [vmem:[%s782_s4] sm:$0xff] %v401_v25 }

</bundles_post_ra>
